<compile_context>
chip_gen: v7x
topology: tpu7x:2x2x1
jax: 0.10.0
libtpu: 0.0.40
codegen_flags: <defaults>
</compile_context>

<pallas_src>
import jax
import jax.numpy as jnp
from jax.experimental import pallas as pl
from jax.experimental.pallas import tpu as pltpu

# ---- small DeBERTa-style config (synthetic, deterministic init) ----
B = 2            # batch
S = 8            # sequence length
VOCAB = 100      # vocab size
HID = 32         # hidden size
NH = 4           # attention heads
HD = HID // NH   # head dim
LAYERS = 2       # encoder layers
INTER = 64       # FFN intermediate size
NUM_LABELS = 2
LN_EPS = 1e-7    # DeBERTa layer_norm_eps
LV_W = 3 * HID   # lane width of the per-layer small-vector slab (96)

CDT = jnp.bfloat16                      # MXU operand dtype (accumulate in f32)
VMEM = pltpu.MemorySpace.VMEM


def _gelu(x):
    # tanh-approximate GELU, f32 (HF DeBERTa uses exact erf GELU)
    # TODO(synk): exact erf-based GELU if lax.erf lowering is available.
    return 0.5 * x * (1.0 + jnp.tanh(0.7978845608028654 * (x + 0.044715 * x * x * x)))


def _layernorm(x, g, b):
    # f32 elementwise math (v5e has no bf16 VPU/EUP).
    mean = jnp.mean(x, axis=-1, keepdims=True)
    var = jnp.mean(jnp.square(x - mean), axis=-1, keepdims=True)
    return (x - mean) * jax.lax.rsqrt(var + LN_EPS) * g + b


def _mm(x, w):
    # operands already bf16 (cast once per LayerNorm); f32 accumulation on MXU.
    return jnp.dot(x, w, preferred_element_type=jnp.float32)


# ------------------------------ fused Pallas kernel ------------------------------
# per-layer small-vector slab rows (shape (8, LV_W)):
#   0: bqkv (3*HID)   1: bo (HID)    2: attn-LN gamma  3: attn-LN beta
#   4: bi (INTER)     5: bf (HID)    6: ffn-LN gamma   7: ffn-LN beta
# global slab rows (shape (4, HID)):
#   0: emb-LN gamma   1: emb-LN beta 2: pooler bias    3: classifier bias (first NUM_LABELS)

def fused_deberta_kernel(ids_ref, wemb_ref, pos_ref,
                         wqkv_ref, wo_ref, wi_ref, wf_ref, headw_ref,
                         lvec_ref, gvec_ref, out_ref):
    # TODO(synk): DeBERTa disentangled (c2p/p2c) relative-position attention bias
    # omitted; content-to-content attention only (true DeBERTa scale is 1/sqrt(3*HD)).
    scale = 1.0 / (HD ** 0.5)
    gv = gvec_ref[...]                                               # (4, HID) f32

    # ---- fused embedding gather (exact one-hot matmul in f32) + positional add ----
    ids = ids_ref[...]                                               # (B*S, 1) int32
    vocab_iota = jax.lax.broadcasted_iota(jnp.int32, (B * S, VOCAB), 1)
    onehot = (vocab_iota == ids).astype(jnp.float32)                 # (B*S, VOCAB)
    x = jnp.dot(onehot, wemb_ref[...], preferred_element_type=jnp.float32) + pos_ref[...]

    # Embedding LayerNorm; keep f32 copy for residuals, cast once to bf16 for MXU.
    h = _layernorm(x, gv[0:1, :], gv[1:2, :])                        # (B*S, HID) f32
    hb = h.astype(CDT)

    for l in range(LAYERS):       # static unroll; all layer weights are VMEM resident
        lv = lvec_ref[l]                                             # (8, LV_W) f32

        # ---- fused QKV projection: one (B*S,HID) x (HID,3*HID) matmul ----
        qkv = (_mm(hb, wqkv_ref[l]) + lv[0:1, :]).astype(CDT)        # (B*S, 3*HID) bf16

        # ---- batched attention over ALL heads: heads folded into the batch axis ----
        def split_heads(off):
            return jnp.concatenate(
                [qkv[:, off + hh * HD: off + (hh + 1) * HD].reshape(B, S, HD)
                 for hh in range(NH)], axis=0)                       # (NH*B, S, HD)

        qh = split_heads(0)
        kh = split_heads(HID)
        vh = split_heads(2 * HID)
        s = jnp.einsum("bqd,bkd->bqk", qh, kh,
                       preferred_element_type=jnp.float32) * scale   # (NH*B, S, S) f32
        s = s - jnp.max(s, axis=-1, keepdims=True)
        p = jnp.exp(s)
        p = p * pl.reciprocal(jnp.sum(p, axis=-1, keepdims=True), approx=True)
        ctx = jnp.einsum("bqk,bkd->bqd", p.astype(CDT), vh,
                         preferred_element_type=jnp.float32)          # (NH*B, S, HD) f32

        # merge heads back onto lanes, then ONE full-width output projection
        ctx = jnp.concatenate(
            [ctx[hh * B:(hh + 1) * B].reshape(B * S, HD) for hh in range(NH)], axis=1)
        attn = _mm(ctx.astype(CDT), wo_ref[l]) + lv[1:2, :HID]        # (B*S, HID)
        h = _layernorm(attn + h, lv[2:3, :HID], lv[3:4, :HID])
        hb = h.astype(CDT)

        # ---- FFN (intermediate stays VMEM resident) ----
        inter = _gelu(_mm(hb, wi_ref[l]) + lv[4:5, :INTER])           # (B*S, INTER) f32
        ff = _mm(inter.astype(CDT), wf_ref[l]) + lv[5:6, :HID]
        h = _layernorm(ff + h, lv[6:7, :HID], lv[7:8, :HID])
        hb = h.astype(CDT)

    # ---- ContextPooler: first token -> dense -> GELU (dropout = identity) ----
    cls_tok = hb.reshape(B, S, HID)[:, 0, :]                          # (B, HID) bf16
    pooled = _gelu(jnp.dot(cls_tok, headw_ref[:, :HID],
                           preferred_element_type=jnp.float32) + gv[2:3, :HID])
    # ---- classification head ----
    out_ref[...] = (jnp.dot(pooled.astype(CDT), headw_ref[:, HID:],
                            preferred_element_type=jnp.float32)
                    + gv[3:4, :NUM_LABELS])                           # (B, NUM_LABELS)


# ------------------------------ forward (glue) ------------------------------

def deberta_classifier_forward(params, input_ids, mask=None):
    # NOTE: like the PyTorch module, `mask` is accepted but NOT passed to the
    # encoder (attention_mask defaults to all-ones -> no masking needed).
    del mask

    ids = input_ids.reshape(B * S, 1).astype(jnp.int32)

    logits = pl.pallas_call(
        fused_deberta_kernel,
        out_shape=jax.ShapeDtypeStruct((B, NUM_LABELS), jnp.float32),
        in_specs=[pl.BlockSpec(memory_space=VMEM)] * 10,
        out_specs=pl.BlockSpec(memory_space=VMEM),
    )(ids,
      params["word_emb"], params["pos_emb"],
      params["wqkv"], params["wo"], params["wi"], params["wf"],
      params["head_w"], params["lvec"], params["gvec"])

    return (logits,)   # matches HF return_dict=False tuple output


# ------------------------------ deterministic init ------------------------------

def init_params(key):
    ks = iter(jax.random.split(key, 64))

    def nrm(*shape):
        return 0.02 * jax.random.normal(next(ks), shape, jnp.float32)

    word_emb = nrm(VOCAB, HID)                        # f32: exact one-hot gather in-kernel
    pos_emb = jnp.tile(nrm(S, HID), (B, 1))           # pre-tiled to (B*S, HID), static

    pool_w = nrm(HID, HID)
    cls_w = nrm(HID, NUM_LABELS)
    head_w = jnp.concatenate([pool_w, cls_w], axis=1).astype(CDT)   # (HID, HID+NUM_LABELS)

    # global small-vector slab: [emb_ln_g; emb_ln_b; pool_b; cls_b(padded to HID)]
    gvec = jnp.zeros((4, HID), jnp.float32).at[0].set(1.0)

    wqkv, wo, wi, wf, lvec = [], [], [], [], []
    for _ in range(LAYERS):
        wq, wk, wv = nrm(HID, HID), nrm(HID, HID), nrm(HID, HID)
        wqkv.append(jnp.concatenate([wq, wk, wv], axis=1))           # (HID, 3*HID)
        wo.append(nrm(HID, HID))                                     # original (HID, HID)
        wi.append(nrm(HID, INTER))
        wf.append(nrm(INTER, HID))
        # per-layer small-vector slab (biases zero; DeBERTa v1 has no key bias)
        lv = jnp.zeros((8, LV_W), jnp.float32)
        lv = lv.at[2, :HID].set(1.0)                                 # attn LN gamma
        lv = lv.at[6, :HID].set(1.0)                                 # ffn  LN gamma
        lvec.append(lv)

    return dict(
        word_emb=word_emb,
        pos_emb=pos_emb,
        wqkv=jnp.stack(wqkv).astype(CDT),      # (L, HID, 3*HID)
        wo=jnp.stack(wo).astype(CDT),          # (L, HID, HID)
        wi=jnp.stack(wi).astype(CDT),          # (L, HID, INTER)
        wf=jnp.stack(wf).astype(CDT),          # (L, INTER, HID)
        head_w=head_w,                         # (HID, HID+NUM_LABELS)
        lvec=jnp.stack(lvec),                  # (L, 8, 96)
        gvec=gvec,                             # (4, HID)
    )


if __name__ == "__main__":
    root = jax.random.PRNGKey(0)
    pkey, ikey = jax.random.split(root)
    params = init_params(pkey)

    input_ids = jax.random.randint(ikey, (B, S), 0, VOCAB, dtype=jnp.int32)
    mask = jnp.ones((B, S), jnp.int32)   # accepted but unused, matching the module

    fwd = jax.jit(deberta_classifier_forward)
    out = fwd(params, input_ids, mask)
    logits = jax.block_until_ready(out[0])
    assert logits.shape == (B, NUM_LABELS)
    assert logits.dtype == jnp.float32
    print("KERNEL_OK")
</pallas_src>

<mosaic_0001>
module attributes {stable_mosaic.version = 11 : i64} {
  func.func @fused_deberta_kernel(%arg0: memref<16x1xi32, #tpu.memory_space<vmem>>, %arg1: memref<100x32xf32, #tpu.memory_space<vmem>>, %arg2: memref<16x32xf32, #tpu.memory_space<vmem>>, %arg3: memref<2x32x96xbf16, #tpu.memory_space<vmem>>, %arg4: memref<2x32x32xbf16, #tpu.memory_space<vmem>>, %arg5: memref<2x32x64xbf16, #tpu.memory_space<vmem>>, %arg6: memref<2x64x32xbf16, #tpu.memory_space<vmem>>, %arg7: memref<32x34xbf16, #tpu.memory_space<vmem>>, %arg8: memref<2x8x96xf32, #tpu.memory_space<vmem>>, %arg9: memref<4x32xf32, #tpu.memory_space<vmem>>, %arg10: memref<2x2xf32, #tpu.memory_space<vmem>>) attributes {dimension_semantics = [], scalar_prefetch = 0 : i64, scratch_operands = 0 : i64, tpu.core_type = #tpu.core_type<tc>} {
    %c0 = arith.constant 0 : index
    %c0_0 = arith.constant 0 : index
    %0 = vector.load %arg9[%c0, %c0_0] : memref<4x32xf32, #tpu.memory_space<vmem>>, vector<4x32xf32>
    %c0_1 = arith.constant 0 : index
    %c0_2 = arith.constant 0 : index
    %1 = vector.load %arg0[%c0_1, %c0_2] : memref<16x1xi32, #tpu.memory_space<vmem>>, vector<16x1xi32>
    %2 = tpu.iota {dimensions = array<i32: 1>} : vector<16x100xi32>
    %3 = vector.broadcast %1 : vector<16x1xi32> to vector<16x100xi32>
    %4 = arith.cmpi eq, %2, %3 : vector<16x100xi32>
    %5 = arith.extui %4 : vector<16x100xi1> to vector<16x100xi32>
    %6 = arith.sitofp %5 : vector<16x100xi32> to vector<16x100xf32>
    %c0_3 = arith.constant 0 : index
    %c0_4 = arith.constant 0 : index
    %7 = vector.load %arg1[%c0_3, %c0_4] : memref<100x32xf32, #tpu.memory_space<vmem>>, vector<100x32xf32>
    %cst = arith.constant dense<0.000000e+00> : vector<16x32xf32>
    %8 = tpu.matmul %6, %7, %cst {dimension_numbers = #tpu.dot_dimension_numbers<[1], [0], [0], [1], [0, 0, 1, 1], [], []>} : vector<16x100xf32>, vector<100x32xf32>, vector<16x32xf32> -> vector<16x32xf32>
    %c0_5 = arith.constant 0 : index
    %c0_6 = arith.constant 0 : index
    %9 = vector.load %arg2[%c0_5, %c0_6] : memref<16x32xf32, #tpu.memory_space<vmem>>, vector<16x32xf32>
    %10 = arith.addf %8, %9 : vector<16x32xf32>
    %11 = vector.extract_strided_slice %0 {offsets = [0, 0], sizes = [1, 32], strides = [1, 1]} : vector<4x32xf32> to vector<1x32xf32>
    %12 = vector.extract_strided_slice %0 {offsets = [1, 0], sizes = [1, 32], strides = [1, 1]} : vector<4x32xf32> to vector<1x32xf32>
    %cst_7 = arith.constant dense<0.000000e+00> : vector<16xf32>
    %13 = vector.multi_reduction <add>, %10, %cst_7 [1] : vector<16x32xf32> to vector<16xf32>
    %14 = vector.shape_cast %13 : vector<16xf32> to vector<16x1xf32>
    %cst_8 = arith.constant 3.200000e+01 : f32
    %15 = vector.broadcast %cst_8 : f32 to vector<16x1xf32>
    %16 = arith.divf %14, %15 : vector<16x1xf32>
    %17 = vector.broadcast %16 : vector<16x1xf32> to vector<16x32xf32>
    %18 = arith.subf %10, %17 : vector<16x32xf32>
    %19 = arith.mulf %18, %18 : vector<16x32xf32>
    %cst_9 = arith.constant dense<0.000000e+00> : vector<16xf32>
    %20 = vector.multi_reduction <add>, %19, %cst_9 [1] : vector<16x32xf32> to vector<16xf32>
    %21 = vector.shape_cast %20 : vector<16xf32> to vector<16x1xf32>
    %cst_10 = arith.constant 3.200000e+01 : f32
    %22 = vector.broadcast %cst_10 : f32 to vector<16x1xf32>
    %23 = arith.divf %21, %22 : vector<16x1xf32>
    %24 = vector.broadcast %16 : vector<16x1xf32> to vector<16x32xf32>
    %25 = arith.subf %10, %24 : vector<16x32xf32>
    %cst_11 = arith.constant 1.000000e-07 : f32
    %26 = vector.broadcast %cst_11 : f32 to vector<16x1xf32>
    %27 = arith.addf %23, %26 : vector<16x1xf32>
    %28 = math.rsqrt %27 : vector<16x1xf32>
    %29 = vector.broadcast %28 : vector<16x1xf32> to vector<16x32xf32>
    %30 = arith.mulf %25, %29 : vector<16x32xf32>
    %31 = vector.broadcast %11 : vector<1x32xf32> to vector<16x32xf32>
    %32 = arith.mulf %30, %31 : vector<16x32xf32>
    %33 = vector.broadcast %12 : vector<1x32xf32> to vector<16x32xf32>
    %34 = arith.addf %32, %33 : vector<16x32xf32>
    %35 = arith.truncf %34 : vector<16x32xf32> to vector<16x32xbf16>
    %c0_12 = arith.constant 0 : index
    %c0_13 = arith.constant 0 : index
    %c0_14 = arith.constant 0 : index
    %36 = vector.load %arg8[%c0_12, %c0_13, %c0_14] : memref<2x8x96xf32, #tpu.memory_space<vmem>>, vector<1x8x96xf32>
    %37 = vector.shape_cast %36 : vector<1x8x96xf32> to vector<8x96xf32>
    %c0_15 = arith.constant 0 : index
    %c0_16 = arith.constant 0 : index
    %c0_17 = arith.constant 0 : index
    %38 = vector.load %arg3[%c0_15, %c0_16, %c0_17] : memref<2x32x96xbf16, #tpu.memory_space<vmem>>, vector<1x32x96xbf16>
    %39 = vector.shape_cast %38 : vector<1x32x96xbf16> to vector<32x96xbf16>
    %cst_18 = arith.constant dense<0.000000e+00> : vector<16x96xf32>
    %40 = tpu.matmul %35, %39, %cst_18 {dimension_numbers = #tpu.dot_dimension_numbers<[1], [0], [0], [1], [0, 0, 1, 1], [], []>} : vector<16x32xbf16>, vector<32x96xbf16>, vector<16x96xf32> -> vector<16x96xf32>
    %41 = vector.extract_strided_slice %37 {offsets = [0, 0], sizes = [1, 96], strides = [1, 1]} : vector<8x96xf32> to vector<1x96xf32>
    %42 = vector.broadcast %41 : vector<1x96xf32> to vector<16x96xf32>
    %43 = arith.addf %40, %42 : vector<16x96xf32>
    %44 = arith.truncf %43 : vector<16x96xf32> to vector<16x96xbf16>
    %45 = vector.extract_strided_slice %44 {offsets = [0, 0], sizes = [16, 8], strides = [1, 1]} : vector<16x96xbf16> to vector<16x8xbf16>
    %46 = vector.shape_cast %45 : vector<16x8xbf16> to vector<2x8x8xbf16>
    %47 = vector.extract_strided_slice %44 {offsets = [0, 8], sizes = [16, 8], strides = [1, 1]} : vector<16x96xbf16> to vector<16x8xbf16>
    %48 = vector.shape_cast %47 : vector<16x8xbf16> to vector<2x8x8xbf16>
    %49 = vector.extract_strided_slice %44 {offsets = [0, 16], sizes = [16, 8], strides = [1, 1]} : vector<16x96xbf16> to vector<16x8xbf16>
    %50 = vector.shape_cast %49 : vector<16x8xbf16> to vector<2x8x8xbf16>
    %51 = vector.extract_strided_slice %44 {offsets = [0, 24], sizes = [16, 8], strides = [1, 1]} : vector<16x96xbf16> to vector<16x8xbf16>
    %52 = vector.shape_cast %51 : vector<16x8xbf16> to vector<2x8x8xbf16>
    %53 = tpu.concatenate %46, %48, %50, %52 in 0 : vector<2x8x8xbf16>, vector<2x8x8xbf16>, vector<2x8x8xbf16>, vector<2x8x8xbf16> -> vector<8x8x8xbf16>
    %54 = vector.extract_strided_slice %44 {offsets = [0, 32], sizes = [16, 8], strides = [1, 1]} : vector<16x96xbf16> to vector<16x8xbf16>
    %55 = vector.shape_cast %54 : vector<16x8xbf16> to vector<2x8x8xbf16>
    %56 = vector.extract_strided_slice %44 {offsets = [0, 40], sizes = [16, 8], strides = [1, 1]} : vector<16x96xbf16> to vector<16x8xbf16>
    %57 = vector.shape_cast %56 : vector<16x8xbf16> to vector<2x8x8xbf16>
    %58 = vector.extract_strided_slice %44 {offsets = [0, 48], sizes = [16, 8], strides = [1, 1]} : vector<16x96xbf16> to vector<16x8xbf16>
    %59 = vector.shape_cast %58 : vector<16x8xbf16> to vector<2x8x8xbf16>
    %60 = vector.extract_strided_slice %44 {offsets = [0, 56], sizes = [16, 8], strides = [1, 1]} : vector<16x96xbf16> to vector<16x8xbf16>
    %61 = vector.shape_cast %60 : vector<16x8xbf16> to vector<2x8x8xbf16>
    %62 = tpu.concatenate %55, %57, %59, %61 in 0 : vector<2x8x8xbf16>, vector<2x8x8xbf16>, vector<2x8x8xbf16>, vector<2x8x8xbf16> -> vector<8x8x8xbf16>
    %63 = vector.extract_strided_slice %44 {offsets = [0, 64], sizes = [16, 8], strides = [1, 1]} : vector<16x96xbf16> to vector<16x8xbf16>
    %64 = vector.shape_cast %63 : vector<16x8xbf16> to vector<2x8x8xbf16>
    %65 = vector.extract_strided_slice %44 {offsets = [0, 72], sizes = [16, 8], strides = [1, 1]} : vector<16x96xbf16> to vector<16x8xbf16>
    %66 = vector.shape_cast %65 : vector<16x8xbf16> to vector<2x8x8xbf16>
    %67 = vector.extract_strided_slice %44 {offsets = [0, 80], sizes = [16, 8], strides = [1, 1]} : vector<16x96xbf16> to vector<16x8xbf16>
    %68 = vector.shape_cast %67 : vector<16x8xbf16> to vector<2x8x8xbf16>
    %69 = vector.extract_strided_slice %44 {offsets = [0, 88], sizes = [16, 8], strides = [1, 1]} : vector<16x96xbf16> to vector<16x8xbf16>
    %70 = vector.shape_cast %69 : vector<16x8xbf16> to vector<2x8x8xbf16>
    %71 = tpu.concatenate %64, %66, %68, %70 in 0 : vector<2x8x8xbf16>, vector<2x8x8xbf16>, vector<2x8x8xbf16>, vector<2x8x8xbf16> -> vector<8x8x8xbf16>
    "tpu.trace_start"() <{level = 10 : i32, message = "bqd,bkd->bqk"}> : () -> ()
    %cst_19 = arith.constant dense<0.000000e+00> : vector<8x8x8xf32>
    %72 = tpu.matmul %53, %62, %cst_19 {dimension_numbers = #tpu.dot_dimension_numbers<[2], [2], [1], [1], [0, 0, 0, 1, 1, 1], [0], [0]>} : vector<8x8x8xbf16>, vector<8x8x8xbf16>, vector<8x8x8xf32> -> vector<8x8x8xf32>
    "tpu.trace_stop"() : () -> ()
    %cst_20 = arith.constant 0.353553385 : f32
    %73 = vector.broadcast %cst_20 : f32 to vector<8x8x8xf32>
    %74 = arith.mulf %72, %73 : vector<8x8x8xf32>
    %cst_21 = arith.constant dense<0xFF800000> : vector<8x8xf32>
    %75 = vector.multi_reduction <maximumf>, %74, %cst_21 [2] : vector<8x8x8xf32> to vector<8x8xf32>
    %76 = vector.shape_cast %75 : vector<8x8xf32> to vector<8x8x1xf32>
    %77 = vector.broadcast %76 : vector<8x8x1xf32> to vector<8x8x8xf32>
    %78 = arith.subf %74, %77 : vector<8x8x8xf32>
    %79 = math.exp %78 : vector<8x8x8xf32>
    %cst_22 = arith.constant dense<0.000000e+00> : vector<8x8xf32>
    %80 = vector.multi_reduction <add>, %79, %cst_22 [2] : vector<8x8x8xf32> to vector<8x8xf32>
    %81 = vector.shape_cast %80 : vector<8x8xf32> to vector<8x8x1xf32>
    %82 = tpu.reciprocal %81 {approx = true} : vector<8x8x1xf32> -> vector<8x8x1xf32>
    %83 = vector.broadcast %82 : vector<8x8x1xf32> to vector<8x8x8xf32>
    %84 = arith.mulf %79, %83 : vector<8x8x8xf32>
    %85 = arith.truncf %84 : vector<8x8x8xf32> to vector<8x8x8xbf16>
    "tpu.trace_start"() <{level = 10 : i32, message = "bqk,bkd->bqd"}> : () -> ()
    %cst_23 = arith.constant dense<0.000000e+00> : vector<8x8x8xf32>
    %86 = tpu.matmul %85, %71, %cst_23 {dimension_numbers = #tpu.dot_dimension_numbers<[2], [1], [1], [2], [0, 0, 0, 1, 1, 2], [0], [0]>} : vector<8x8x8xbf16>, vector<8x8x8xbf16>, vector<8x8x8xf32> -> vector<8x8x8xf32>
    "tpu.trace_stop"() : () -> ()
    %87 = vector.extract_strided_slice %86 {offsets = [0, 0, 0], sizes = [2, 8, 8], strides = [1, 1, 1]} : vector<8x8x8xf32> to vector<2x8x8xf32>
    %88 = vector.shape_cast %87 : vector<2x8x8xf32> to vector<16x8xf32>
    %89 = vector.extract_strided_slice %86 {offsets = [2, 0, 0], sizes = [2, 8, 8], strides = [1, 1, 1]} : vector<8x8x8xf32> to vector<2x8x8xf32>
    %90 = vector.shape_cast %89 : vector<2x8x8xf32> to vector<16x8xf32>
    %91 = vector.extract_strided_slice %86 {offsets = [4, 0, 0], sizes = [2, 8, 8], strides = [1, 1, 1]} : vector<8x8x8xf32> to vector<2x8x8xf32>
    %92 = vector.shape_cast %91 : vector<2x8x8xf32> to vector<16x8xf32>
    %93 = vector.extract_strided_slice %86 {offsets = [6, 0, 0], sizes = [2, 8, 8], strides = [1, 1, 1]} : vector<8x8x8xf32> to vector<2x8x8xf32>
    %94 = vector.shape_cast %93 : vector<2x8x8xf32> to vector<16x8xf32>
    %95 = tpu.concatenate %88, %90, %92, %94 in 1 : vector<16x8xf32>, vector<16x8xf32>, vector<16x8xf32>, vector<16x8xf32> -> vector<16x32xf32>
    %96 = arith.truncf %95 : vector<16x32xf32> to vector<16x32xbf16>
    %c0_24 = arith.constant 0 : index
    %c0_25 = arith.constant 0 : index
    %c0_26 = arith.constant 0 : index
    %97 = vector.load %arg4[%c0_24, %c0_25, %c0_26] : memref<2x32x32xbf16, #tpu.memory_space<vmem>>, vector<1x32x32xbf16>
    %98 = vector.shape_cast %97 : vector<1x32x32xbf16> to vector<32x32xbf16>
    %cst_27 = arith.constant dense<0.000000e+00> : vector<16x32xf32>
    %99 = tpu.matmul %96, %98, %cst_27 {dimension_numbers = #tpu.dot_dimension_numbers<[1], [0], [0], [1], [0, 0, 1, 1], [], []>} : vector<16x32xbf16>, vector<32x32xbf16>, vector<16x32xf32> -> vector<16x32xf32>
    %100 = vector.extract_strided_slice %37 {offsets = [1, 0], sizes = [1, 32], strides = [1, 1]} : vector<8x96xf32> to vector<1x32xf32>
    %101 = vector.broadcast %100 : vector<1x32xf32> to vector<16x32xf32>
    %102 = arith.addf %99, %101 : vector<16x32xf32>
    %103 = arith.addf %102, %34 : vector<16x32xf32>
    %104 = vector.extract_strided_slice %37 {offsets = [2, 0], sizes = [1, 32], strides = [1, 1]} : vector<8x96xf32> to vector<1x32xf32>
    %105 = vector.extract_strided_slice %37 {offsets = [3, 0], sizes = [1, 32], strides = [1, 1]} : vector<8x96xf32> to vector<1x32xf32>
    %cst_28 = arith.constant dense<0.000000e+00> : vector<16xf32>
    %106 = vector.multi_reduction <add>, %103, %cst_28 [1] : vector<16x32xf32> to vector<16xf32>
    %107 = vector.shape_cast %106 : vector<16xf32> to vector<16x1xf32>
    %cst_29 = arith.constant 3.200000e+01 : f32
    %108 = vector.broadcast %cst_29 : f32 to vector<16x1xf32>
    %109 = arith.divf %107, %108 : vector<16x1xf32>
    %110 = vector.broadcast %109 : vector<16x1xf32> to vector<16x32xf32>
    %111 = arith.subf %103, %110 : vector<16x32xf32>
    %112 = arith.mulf %111, %111 : vector<16x32xf32>
    %cst_30 = arith.constant dense<0.000000e+00> : vector<16xf32>
    %113 = vector.multi_reduction <add>, %112, %cst_30 [1] : vector<16x32xf32> to vector<16xf32>
    %114 = vector.shape_cast %113 : vector<16xf32> to vector<16x1xf32>
    %cst_31 = arith.constant 3.200000e+01 : f32
    %115 = vector.broadcast %cst_31 : f32 to vector<16x1xf32>
    %116 = arith.divf %114, %115 : vector<16x1xf32>
    %117 = vector.broadcast %109 : vector<16x1xf32> to vector<16x32xf32>
    %118 = arith.subf %103, %117 : vector<16x32xf32>
    %cst_32 = arith.constant 1.000000e-07 : f32
    %119 = vector.broadcast %cst_32 : f32 to vector<16x1xf32>
    %120 = arith.addf %116, %119 : vector<16x1xf32>
    %121 = math.rsqrt %120 : vector<16x1xf32>
    %122 = vector.broadcast %121 : vector<16x1xf32> to vector<16x32xf32>
    %123 = arith.mulf %118, %122 : vector<16x32xf32>
    %124 = vector.broadcast %104 : vector<1x32xf32> to vector<16x32xf32>
    %125 = arith.mulf %123, %124 : vector<16x32xf32>
    %126 = vector.broadcast %105 : vector<1x32xf32> to vector<16x32xf32>
    %127 = arith.addf %125, %126 : vector<16x32xf32>
    %128 = arith.truncf %127 : vector<16x32xf32> to vector<16x32xbf16>
    %c0_33 = arith.constant 0 : index
    %c0_34 = arith.constant 0 : index
    %c0_35 = arith.constant 0 : index
    %129 = vector.load %arg5[%c0_33, %c0_34, %c0_35] : memref<2x32x64xbf16, #tpu.memory_space<vmem>>, vector<1x32x64xbf16>
    %130 = vector.shape_cast %129 : vector<1x32x64xbf16> to vector<32x64xbf16>
    %cst_36 = arith.constant dense<0.000000e+00> : vector<16x64xf32>
    %131 = tpu.matmul %128, %130, %cst_36 {dimension_numbers = #tpu.dot_dimension_numbers<[1], [0], [0], [1], [0, 0, 1, 1], [], []>} : vector<16x32xbf16>, vector<32x64xbf16>, vector<16x64xf32> -> vector<16x64xf32>
    %132 = vector.extract_strided_slice %37 {offsets = [4, 0], sizes = [1, 64], strides = [1, 1]} : vector<8x96xf32> to vector<1x64xf32>
    %133 = vector.broadcast %132 : vector<1x64xf32> to vector<16x64xf32>
    %134 = arith.addf %131, %133 : vector<16x64xf32>
    %cst_37 = arith.constant 5.000000e-01 : f32
    %135 = vector.broadcast %cst_37 : f32 to vector<16x64xf32>
    %136 = arith.mulf %135, %134 : vector<16x64xf32>
    %cst_38 = arith.constant 4.471500e-02 : f32
    %137 = vector.broadcast %cst_38 : f32 to vector<16x64xf32>
    %138 = arith.mulf %137, %134 : vector<16x64xf32>
    %139 = arith.mulf %138, %134 : vector<16x64xf32>
    %140 = arith.mulf %139, %134 : vector<16x64xf32>
    %141 = arith.addf %134, %140 : vector<16x64xf32>
    %cst_39 = arith.constant 0.797884583 : f32
    %142 = vector.broadcast %cst_39 : f32 to vector<16x64xf32>
    %143 = arith.mulf %142, %141 : vector<16x64xf32>
    %144 = math.tanh %143 : vector<16x64xf32>
    %cst_40 = arith.constant 1.000000e+00 : f32
    %145 = vector.broadcast %cst_40 : f32 to vector<16x64xf32>
    %146 = arith.addf %145, %144 : vector<16x64xf32>
    %147 = arith.mulf %136, %146 : vector<16x64xf32>
    %148 = arith.truncf %147 : vector<16x64xf32> to vector<16x64xbf16>
    %c0_41 = arith.constant 0 : index
    %c0_42 = arith.constant 0 : index
    %c0_43 = arith.constant 0 : index
    %149 = vector.load %arg6[%c0_41, %c0_42, %c0_43] : memref<2x64x32xbf16, #tpu.memory_space<vmem>>, vector<1x64x32xbf16>
    %150 = vector.shape_cast %149 : vector<1x64x32xbf16> to vector<64x32xbf16>
    %cst_44 = arith.constant dense<0.000000e+00> : vector<16x32xf32>
    %151 = tpu.matmul %148, %150, %cst_44 {dimension_numbers = #tpu.dot_dimension_numbers<[1], [0], [0], [1], [0, 0, 1, 1], [], []>} : vector<16x64xbf16>, vector<64x32xbf16>, vector<16x32xf32> -> vector<16x32xf32>
    %152 = vector.extract_strided_slice %37 {offsets = [5, 0], sizes = [1, 32], strides = [1, 1]} : vector<8x96xf32> to vector<1x32xf32>
    %153 = vector.broadcast %152 : vector<1x32xf32> to vector<16x32xf32>
    %154 = arith.addf %151, %153 : vector<16x32xf32>
    %155 = arith.addf %154, %127 : vector<16x32xf32>
    %156 = vector.extract_strided_slice %37 {offsets = [6, 0], sizes = [1, 32], strides = [1, 1]} : vector<8x96xf32> to vector<1x32xf32>
    %157 = vector.extract_strided_slice %37 {offsets = [7, 0], sizes = [1, 32], strides = [1, 1]} : vector<8x96xf32> to vector<1x32xf32>
    %cst_45 = arith.constant dense<0.000000e+00> : vector<16xf32>
    %158 = vector.multi_reduction <add>, %155, %cst_45 [1] : vector<16x32xf32> to vector<16xf32>
    %159 = vector.shape_cast %158 : vector<16xf32> to vector<16x1xf32>
    %cst_46 = arith.constant 3.200000e+01 : f32
    %160 = vector.broadcast %cst_46 : f32 to vector<16x1xf32>
    %161 = arith.divf %159, %160 : vector<16x1xf32>
    %162 = vector.broadcast %161 : vector<16x1xf32> to vector<16x32xf32>
    %163 = arith.subf %155, %162 : vector<16x32xf32>
    %164 = arith.mulf %163, %163 : vector<16x32xf32>
    %cst_47 = arith.constant dense<0.000000e+00> : vector<16xf32>
    %165 = vector.multi_reduction <add>, %164, %cst_47 [1] : vector<16x32xf32> to vector<16xf32>
    %166 = vector.shape_cast %165 : vector<16xf32> to vector<16x1xf32>
    %cst_48 = arith.constant 3.200000e+01 : f32
    %167 = vector.broadcast %cst_48 : f32 to vector<16x1xf32>
    %168 = arith.divf %166, %167 : vector<16x1xf32>
    %169 = vector.broadcast %161 : vector<16x1xf32> to vector<16x32xf32>
    %170 = arith.subf %155, %169 : vector<16x32xf32>
    %cst_49 = arith.constant 1.000000e-07 : f32
    %171 = vector.broadcast %cst_49 : f32 to vector<16x1xf32>
    %172 = arith.addf %168, %171 : vector<16x1xf32>
    %173 = math.rsqrt %172 : vector<16x1xf32>
    %174 = vector.broadcast %173 : vector<16x1xf32> to vector<16x32xf32>
    %175 = arith.mulf %170, %174 : vector<16x32xf32>
    %176 = vector.broadcast %156 : vector<1x32xf32> to vector<16x32xf32>
    %177 = arith.mulf %175, %176 : vector<16x32xf32>
    %178 = vector.broadcast %157 : vector<1x32xf32> to vector<16x32xf32>
    %179 = arith.addf %177, %178 : vector<16x32xf32>
    %180 = arith.truncf %179 : vector<16x32xf32> to vector<16x32xbf16>
    %c1 = arith.constant 1 : index
    %c0_50 = arith.constant 0 : index
    %c0_51 = arith.constant 0 : index
    %181 = vector.load %arg8[%c1, %c0_50, %c0_51] : memref<2x8x96xf32, #tpu.memory_space<vmem>>, vector<1x8x96xf32>
    %182 = vector.shape_cast %181 : vector<1x8x96xf32> to vector<8x96xf32>
    %c1_52 = arith.constant 1 : index
    %c0_53 = arith.constant 0 : index
    %c0_54 = arith.constant 0 : index
    %183 = vector.load %arg3[%c1_52, %c0_53, %c0_54] : memref<2x32x96xbf16, #tpu.memory_space<vmem>>, vector<1x32x96xbf16>
    %184 = vector.shape_cast %183 : vector<1x32x96xbf16> to vector<32x96xbf16>
    %cst_55 = arith.constant dense<0.000000e+00> : vector<16x96xf32>
    %185 = tpu.matmul %180, %184, %cst_55 {dimension_numbers = #tpu.dot_dimension_numbers<[1], [0], [0], [1], [0, 0, 1, 1], [], []>} : vector<16x32xbf16>, vector<32x96xbf16>, vector<16x96xf32> -> vector<16x96xf32>
    %186 = vector.extract_strided_slice %182 {offsets = [0, 0], sizes = [1, 96], strides = [1, 1]} : vector<8x96xf32> to vector<1x96xf32>
    %187 = vector.broadcast %186 : vector<1x96xf32> to vector<16x96xf32>
    %188 = arith.addf %185, %187 : vector<16x96xf32>
    %189 = arith.truncf %188 : vector<16x96xf32> to vector<16x96xbf16>
    %190 = vector.extract_strided_slice %189 {offsets = [0, 0], sizes = [16, 8], strides = [1, 1]} : vector<16x96xbf16> to vector<16x8xbf16>
    %191 = vector.shape_cast %190 : vector<16x8xbf16> to vector<2x8x8xbf16>
    %192 = vector.extract_strided_slice %189 {offsets = [0, 8], sizes = [16, 8], strides = [1, 1]} : vector<16x96xbf16> to vector<16x8xbf16>
    %193 = vector.shape_cast %192 : vector<16x8xbf16> to vector<2x8x8xbf16>
    %194 = vector.extract_strided_slice %189 {offsets = [0, 16], sizes = [16, 8], strides = [1, 1]} : vector<16x96xbf16> to vector<16x8xbf16>
    %195 = vector.shape_cast %194 : vector<16x8xbf16> to vector<2x8x8xbf16>
    %196 = vector.extract_strided_slice %189 {offsets = [0, 24], sizes = [16, 8], strides = [1, 1]} : vector<16x96xbf16> to vector<16x8xbf16>
    %197 = vector.shape_cast %196 : vector<16x8xbf16> to vector<2x8x8xbf16>
    %198 = tpu.concatenate %191, %193, %195, %197 in 0 : vector<2x8x8xbf16>, vector<2x8x8xbf16>, vector<2x8x8xbf16>, vector<2x8x8xbf16> -> vector<8x8x8xbf16>
    %199 = vector.extract_strided_slice %189 {offsets = [0, 32], sizes = [16, 8], strides = [1, 1]} : vector<16x96xbf16> to vector<16x8xbf16>
    %200 = vector.shape_cast %199 : vector<16x8xbf16> to vector<2x8x8xbf16>
    %201 = vector.extract_strided_slice %189 {offsets = [0, 40], sizes = [16, 8], strides = [1, 1]} : vector<16x96xbf16> to vector<16x8xbf16>
    %202 = vector.shape_cast %201 : vector<16x8xbf16> to vector<2x8x8xbf16>
    %203 = vector.extract_strided_slice %189 {offsets = [0, 48], sizes = [16, 8], strides = [1, 1]} : vector<16x96xbf16> to vector<16x8xbf16>
    %204 = vector.shape_cast %203 : vector<16x8xbf16> to vector<2x8x8xbf16>
    %205 = vector.extract_strided_slice %189 {offsets = [0, 56], sizes = [16, 8], strides = [1, 1]} : vector<16x96xbf16> to vector<16x8xbf16>
    %206 = vector.shape_cast %205 : vector<16x8xbf16> to vector<2x8x8xbf16>
    %207 = tpu.concatenate %200, %202, %204, %206 in 0 : vector<2x8x8xbf16>, vector<2x8x8xbf16>, vector<2x8x8xbf16>, vector<2x8x8xbf16> -> vector<8x8x8xbf16>
    %208 = vector.extract_strided_slice %189 {offsets = [0, 64], sizes = [16, 8], strides = [1, 1]} : vector<16x96xbf16> to vector<16x8xbf16>
    %209 = vector.shape_cast %208 : vector<16x8xbf16> to vector<2x8x8xbf16>
    %210 = vector.extract_strided_slice %189 {offsets = [0, 72], sizes = [16, 8], strides = [1, 1]} : vector<16x96xbf16> to vector<16x8xbf16>
    %211 = vector.shape_cast %210 : vector<16x8xbf16> to vector<2x8x8xbf16>
    %212 = vector.extract_strided_slice %189 {offsets = [0, 80], sizes = [16, 8], strides = [1, 1]} : vector<16x96xbf16> to vector<16x8xbf16>
    %213 = vector.shape_cast %212 : vector<16x8xbf16> to vector<2x8x8xbf16>
    %214 = vector.extract_strided_slice %189 {offsets = [0, 88], sizes = [16, 8], strides = [1, 1]} : vector<16x96xbf16> to vector<16x8xbf16>
    %215 = vector.shape_cast %214 : vector<16x8xbf16> to vector<2x8x8xbf16>
    %216 = tpu.concatenate %209, %211, %213, %215 in 0 : vector<2x8x8xbf16>, vector<2x8x8xbf16>, vector<2x8x8xbf16>, vector<2x8x8xbf16> -> vector<8x8x8xbf16>
    "tpu.trace_start"() <{level = 10 : i32, message = "bqd,bkd->bqk"}> : () -> ()
    %cst_56 = arith.constant dense<0.000000e+00> : vector<8x8x8xf32>
    %217 = tpu.matmul %198, %207, %cst_56 {dimension_numbers = #tpu.dot_dimension_numbers<[2], [2], [1], [1], [0, 0, 0, 1, 1, 1], [0], [0]>} : vector<8x8x8xbf16>, vector<8x8x8xbf16>, vector<8x8x8xf32> -> vector<8x8x8xf32>
    "tpu.trace_stop"() : () -> ()
    %cst_57 = arith.constant 0.353553385 : f32
    %218 = vector.broadcast %cst_57 : f32 to vector<8x8x8xf32>
    %219 = arith.mulf %217, %218 : vector<8x8x8xf32>
    %cst_58 = arith.constant dense<0xFF800000> : vector<8x8xf32>
    %220 = vector.multi_reduction <maximumf>, %219, %cst_58 [2] : vector<8x8x8xf32> to vector<8x8xf32>
    %221 = vector.shape_cast %220 : vector<8x8xf32> to vector<8x8x1xf32>
    %222 = vector.broadcast %221 : vector<8x8x1xf32> to vector<8x8x8xf32>
    %223 = arith.subf %219, %222 : vector<8x8x8xf32>
    %224 = math.exp %223 : vector<8x8x8xf32>
    %cst_59 = arith.constant dense<0.000000e+00> : vector<8x8xf32>
    %225 = vector.multi_reduction <add>, %224, %cst_59 [2] : vector<8x8x8xf32> to vector<8x8xf32>
    %226 = vector.shape_cast %225 : vector<8x8xf32> to vector<8x8x1xf32>
    %227 = tpu.reciprocal %226 {approx = true} : vector<8x8x1xf32> -> vector<8x8x1xf32>
    %228 = vector.broadcast %227 : vector<8x8x1xf32> to vector<8x8x8xf32>
    %229 = arith.mulf %224, %228 : vector<8x8x8xf32>
    %230 = arith.truncf %229 : vector<8x8x8xf32> to vector<8x8x8xbf16>
    "tpu.trace_start"() <{level = 10 : i32, message = "bqk,bkd->bqd"}> : () -> ()
    %cst_60 = arith.constant dense<0.000000e+00> : vector<8x8x8xf32>
    %231 = tpu.matmul %230, %216, %cst_60 {dimension_numbers = #tpu.dot_dimension_numbers<[2], [1], [1], [2], [0, 0, 0, 1, 1, 2], [0], [0]>} : vector<8x8x8xbf16>, vector<8x8x8xbf16>, vector<8x8x8xf32> -> vector<8x8x8xf32>
    "tpu.trace_stop"() : () -> ()
    %232 = vector.extract_strided_slice %231 {offsets = [0, 0, 0], sizes = [2, 8, 8], strides = [1, 1, 1]} : vector<8x8x8xf32> to vector<2x8x8xf32>
    %233 = vector.shape_cast %232 : vector<2x8x8xf32> to vector<16x8xf32>
    %234 = vector.extract_strided_slice %231 {offsets = [2, 0, 0], sizes = [2, 8, 8], strides = [1, 1, 1]} : vector<8x8x8xf32> to vector<2x8x8xf32>
    %235 = vector.shape_cast %234 : vector<2x8x8xf32> to vector<16x8xf32>
    %236 = vector.extract_strided_slice %231 {offsets = [4, 0, 0], sizes = [2, 8, 8], strides = [1, 1, 1]} : vector<8x8x8xf32> to vector<2x8x8xf32>
    %237 = vector.shape_cast %236 : vector<2x8x8xf32> to vector<16x8xf32>
    %238 = vector.extract_strided_slice %231 {offsets = [6, 0, 0], sizes = [2, 8, 8], strides = [1, 1, 1]} : vector<8x8x8xf32> to vector<2x8x8xf32>
    %239 = vector.shape_cast %238 : vector<2x8x8xf32> to vector<16x8xf32>
    %240 = tpu.concatenate %233, %235, %237, %239 in 1 : vector<16x8xf32>, vector<16x8xf32>, vector<16x8xf32>, vector<16x8xf32> -> vector<16x32xf32>
    %241 = arith.truncf %240 : vector<16x32xf32> to vector<16x32xbf16>
    %c1_61 = arith.constant 1 : index
    %c0_62 = arith.constant 0 : index
    %c0_63 = arith.constant 0 : index
    %242 = vector.load %arg4[%c1_61, %c0_62, %c0_63] : memref<2x32x32xbf16, #tpu.memory_space<vmem>>, vector<1x32x32xbf16>
    %243 = vector.shape_cast %242 : vector<1x32x32xbf16> to vector<32x32xbf16>
    %cst_64 = arith.constant dense<0.000000e+00> : vector<16x32xf32>
    %244 = tpu.matmul %241, %243, %cst_64 {dimension_numbers = #tpu.dot_dimension_numbers<[1], [0], [0], [1], [0, 0, 1, 1], [], []>} : vector<16x32xbf16>, vector<32x32xbf16>, vector<16x32xf32> -> vector<16x32xf32>
    %245 = vector.extract_strided_slice %182 {offsets = [1, 0], sizes = [1, 32], strides = [1, 1]} : vector<8x96xf32> to vector<1x32xf32>
    %246 = vector.broadcast %245 : vector<1x32xf32> to vector<16x32xf32>
    %247 = arith.addf %244, %246 : vector<16x32xf32>
    %248 = arith.addf %247, %179 : vector<16x32xf32>
    %249 = vector.extract_strided_slice %182 {offsets = [2, 0], sizes = [1, 32], strides = [1, 1]} : vector<8x96xf32> to vector<1x32xf32>
    %250 = vector.extract_strided_slice %182 {offsets = [3, 0], sizes = [1, 32], strides = [1, 1]} : vector<8x96xf32> to vector<1x32xf32>
    %cst_65 = arith.constant dense<0.000000e+00> : vector<16xf32>
    %251 = vector.multi_reduction <add>, %248, %cst_65 [1] : vector<16x32xf32> to vector<16xf32>
    %252 = vector.shape_cast %251 : vector<16xf32> to vector<16x1xf32>
    %cst_66 = arith.constant 3.200000e+01 : f32
    %253 = vector.broadcast %cst_66 : f32 to vector<16x1xf32>
    %254 = arith.divf %252, %253 : vector<16x1xf32>
    %255 = vector.broadcast %254 : vector<16x1xf32> to vector<16x32xf32>
    %256 = arith.subf %248, %255 : vector<16x32xf32>
    %257 = arith.mulf %256, %256 : vector<16x32xf32>
    %cst_67 = arith.constant dense<0.000000e+00> : vector<16xf32>
    %258 = vector.multi_reduction <add>, %257, %cst_67 [1] : vector<16x32xf32> to vector<16xf32>
    %259 = vector.shape_cast %258 : vector<16xf32> to vector<16x1xf32>
    %cst_68 = arith.constant 3.200000e+01 : f32
    %260 = vector.broadcast %cst_68 : f32 to vector<16x1xf32>
    %261 = arith.divf %259, %260 : vector<16x1xf32>
    %262 = vector.broadcast %254 : vector<16x1xf32> to vector<16x32xf32>
    %263 = arith.subf %248, %262 : vector<16x32xf32>
    %cst_69 = arith.constant 1.000000e-07 : f32
    %264 = vector.broadcast %cst_69 : f32 to vector<16x1xf32>
    %265 = arith.addf %261, %264 : vector<16x1xf32>
    %266 = math.rsqrt %265 : vector<16x1xf32>
    %267 = vector.broadcast %266 : vector<16x1xf32> to vector<16x32xf32>
    %268 = arith.mulf %263, %267 : vector<16x32xf32>
    %269 = vector.broadcast %249 : vector<1x32xf32> to vector<16x32xf32>
    %270 = arith.mulf %268, %269 : vector<16x32xf32>
    %271 = vector.broadcast %250 : vector<1x32xf32> to vector<16x32xf32>
    %272 = arith.addf %270, %271 : vector<16x32xf32>
    %273 = arith.truncf %272 : vector<16x32xf32> to vector<16x32xbf16>
    %c1_70 = arith.constant 1 : index
    %c0_71 = arith.constant 0 : index
    %c0_72 = arith.constant 0 : index
    %274 = vector.load %arg5[%c1_70, %c0_71, %c0_72] : memref<2x32x64xbf16, #tpu.memory_space<vmem>>, vector<1x32x64xbf16>
    %275 = vector.shape_cast %274 : vector<1x32x64xbf16> to vector<32x64xbf16>
    %cst_73 = arith.constant dense<0.000000e+00> : vector<16x64xf32>
    %276 = tpu.matmul %273, %275, %cst_73 {dimension_numbers = #tpu.dot_dimension_numbers<[1], [0], [0], [1], [0, 0, 1, 1], [], []>} : vector<16x32xbf16>, vector<32x64xbf16>, vector<16x64xf32> -> vector<16x64xf32>
    %277 = vector.extract_strided_slice %182 {offsets = [4, 0], sizes = [1, 64], strides = [1, 1]} : vector<8x96xf32> to vector<1x64xf32>
    %278 = vector.broadcast %277 : vector<1x64xf32> to vector<16x64xf32>
    %279 = arith.addf %276, %278 : vector<16x64xf32>
    %cst_74 = arith.constant 5.000000e-01 : f32
    %280 = vector.broadcast %cst_74 : f32 to vector<16x64xf32>
    %281 = arith.mulf %280, %279 : vector<16x64xf32>
    %cst_75 = arith.constant 4.471500e-02 : f32
    %282 = vector.broadcast %cst_75 : f32 to vector<16x64xf32>
    %283 = arith.mulf %282, %279 : vector<16x64xf32>
    %284 = arith.mulf %283, %279 : vector<16x64xf32>
    %285 = arith.mulf %284, %279 : vector<16x64xf32>
    %286 = arith.addf %279, %285 : vector<16x64xf32>
    %cst_76 = arith.constant 0.797884583 : f32
    %287 = vector.broadcast %cst_76 : f32 to vector<16x64xf32>
    %288 = arith.mulf %287, %286 : vector<16x64xf32>
    %289 = math.tanh %288 : vector<16x64xf32>
    %cst_77 = arith.constant 1.000000e+00 : f32
    %290 = vector.broadcast %cst_77 : f32 to vector<16x64xf32>
    %291 = arith.addf %290, %289 : vector<16x64xf32>
    %292 = arith.mulf %281, %291 : vector<16x64xf32>
    %293 = arith.truncf %292 : vector<16x64xf32> to vector<16x64xbf16>
    %c1_78 = arith.constant 1 : index
    %c0_79 = arith.constant 0 : index
    %c0_80 = arith.constant 0 : index
    %294 = vector.load %arg6[%c1_78, %c0_79, %c0_80] : memref<2x64x32xbf16, #tpu.memory_space<vmem>>, vector<1x64x32xbf16>
    %295 = vector.shape_cast %294 : vector<1x64x32xbf16> to vector<64x32xbf16>
    %cst_81 = arith.constant dense<0.000000e+00> : vector<16x32xf32>
    %296 = tpu.matmul %293, %295, %cst_81 {dimension_numbers = #tpu.dot_dimension_numbers<[1], [0], [0], [1], [0, 0, 1, 1], [], []>} : vector<16x64xbf16>, vector<64x32xbf16>, vector<16x32xf32> -> vector<16x32xf32>
    %297 = vector.extract_strided_slice %182 {offsets = [5, 0], sizes = [1, 32], strides = [1, 1]} : vector<8x96xf32> to vector<1x32xf32>
    %298 = vector.broadcast %297 : vector<1x32xf32> to vector<16x32xf32>
    %299 = arith.addf %296, %298 : vector<16x32xf32>
    %300 = arith.addf %299, %272 : vector<16x32xf32>
    %301 = vector.extract_strided_slice %182 {offsets = [6, 0], sizes = [1, 32], strides = [1, 1]} : vector<8x96xf32> to vector<1x32xf32>
    %302 = vector.extract_strided_slice %182 {offsets = [7, 0], sizes = [1, 32], strides = [1, 1]} : vector<8x96xf32> to vector<1x32xf32>
    %cst_82 = arith.constant dense<0.000000e+00> : vector<16xf32>
    %303 = vector.multi_reduction <add>, %300, %cst_82 [1] : vector<16x32xf32> to vector<16xf32>
    %304 = vector.shape_cast %303 : vector<16xf32> to vector<16x1xf32>
    %cst_83 = arith.constant 3.200000e+01 : f32
    %305 = vector.broadcast %cst_83 : f32 to vector<16x1xf32>
    %306 = arith.divf %304, %305 : vector<16x1xf32>
    %307 = vector.broadcast %306 : vector<16x1xf32> to vector<16x32xf32>
    %308 = arith.subf %300, %307 : vector<16x32xf32>
    %309 = arith.mulf %308, %308 : vector<16x32xf32>
    %cst_84 = arith.constant dense<0.000000e+00> : vector<16xf32>
    %310 = vector.multi_reduction <add>, %309, %cst_84 [1] : vector<16x32xf32> to vector<16xf32>
    %311 = vector.shape_cast %310 : vector<16xf32> to vector<16x1xf32>
    %cst_85 = arith.constant 3.200000e+01 : f32
    %312 = vector.broadcast %cst_85 : f32 to vector<16x1xf32>
    %313 = arith.divf %311, %312 : vector<16x1xf32>
    %314 = vector.broadcast %306 : vector<16x1xf32> to vector<16x32xf32>
    %315 = arith.subf %300, %314 : vector<16x32xf32>
    %cst_86 = arith.constant 1.000000e-07 : f32
    %316 = vector.broadcast %cst_86 : f32 to vector<16x1xf32>
    %317 = arith.addf %313, %316 : vector<16x1xf32>
    %318 = math.rsqrt %317 : vector<16x1xf32>
    %319 = vector.broadcast %318 : vector<16x1xf32> to vector<16x32xf32>
    %320 = arith.mulf %315, %319 : vector<16x32xf32>
    %321 = vector.broadcast %301 : vector<1x32xf32> to vector<16x32xf32>
    %322 = arith.mulf %320, %321 : vector<16x32xf32>
    %323 = vector.broadcast %302 : vector<1x32xf32> to vector<16x32xf32>
    %324 = arith.addf %322, %323 : vector<16x32xf32>
    %325 = arith.truncf %324 : vector<16x32xf32> to vector<16x32xbf16>
    %326 = vector.shape_cast %325 : vector<16x32xbf16> to vector<2x8x32xbf16>
    %327 = vector.extract_strided_slice %326 {offsets = [0, 0, 0], sizes = [2, 1, 32], strides = [1, 1, 1]} : vector<2x8x32xbf16> to vector<2x1x32xbf16>
    %328 = vector.shape_cast %327 : vector<2x1x32xbf16> to vector<2x32xbf16>
    %c0_87 = arith.constant 0 : index
    %c0_88 = arith.constant 0 : index
    %329 = vector.load %arg7[%c0_87, %c0_88] : memref<32x34xbf16, #tpu.memory_space<vmem>>, vector<32x32xbf16>
    %cst_89 = arith.constant dense<0.000000e+00> : vector<2x32xf32>
    %330 = tpu.matmul %328, %329, %cst_89 {dimension_numbers = #tpu.dot_dimension_numbers<[1], [0], [0], [1], [0, 0, 1, 1], [], []>} : vector<2x32xbf16>, vector<32x32xbf16>, vector<2x32xf32> -> vector<2x32xf32>
    %331 = vector.extract_strided_slice %0 {offsets = [2, 0], sizes = [1, 32], strides = [1, 1]} : vector<4x32xf32> to vector<1x32xf32>
    %332 = vector.broadcast %331 : vector<1x32xf32> to vector<2x32xf32>
    %333 = arith.addf %330, %332 : vector<2x32xf32>
    %cst_90 = arith.constant 5.000000e-01 : f32
    %334 = vector.broadcast %cst_90 : f32 to vector<2x32xf32>
    %335 = arith.mulf %334, %333 : vector<2x32xf32>
    %cst_91 = arith.constant 4.471500e-02 : f32
    %336 = vector.broadcast %cst_91 : f32 to vector<2x32xf32>
    %337 = arith.mulf %336, %333 : vector<2x32xf32>
    %338 = arith.mulf %337, %333 : vector<2x32xf32>
    %339 = arith.mulf %338, %333 : vector<2x32xf32>
    %340 = arith.addf %333, %339 : vector<2x32xf32>
    %cst_92 = arith.constant 0.797884583 : f32
    %341 = vector.broadcast %cst_92 : f32 to vector<2x32xf32>
    %342 = arith.mulf %341, %340 : vector<2x32xf32>
    %343 = math.tanh %342 : vector<2x32xf32>
    %cst_93 = arith.constant 1.000000e+00 : f32
    %344 = vector.broadcast %cst_93 : f32 to vector<2x32xf32>
    %345 = arith.addf %344, %343 : vector<2x32xf32>
    %346 = arith.mulf %335, %345 : vector<2x32xf32>
    %347 = arith.truncf %346 : vector<2x32xf32> to vector<2x32xbf16>
    %c0_94 = arith.constant 0 : index
    %c32 = arith.constant 32 : index
    %348 = vector.load %arg7[%c0_94, %c32] : memref<32x34xbf16, #tpu.memory_space<vmem>>, vector<32x2xbf16>
    %cst_95 = arith.constant dense<0.000000e+00> : vector<2x2xf32>
    %349 = tpu.matmul %347, %348, %cst_95 {dimension_numbers = #tpu.dot_dimension_numbers<[1], [0], [0], [1], [0, 0, 1, 1], [], []>} : vector<2x32xbf16>, vector<32x2xbf16>, vector<2x2xf32> -> vector<2x2xf32>
    %350 = vector.extract_strided_slice %0 {offsets = [3, 0], sizes = [1, 2], strides = [1, 1]} : vector<4x32xf32> to vector<1x2xf32>
    %351 = vector.broadcast %350 : vector<1x2xf32> to vector<2x2xf32>
    %352 = arith.addf %349, %351 : vector<2x2xf32>
    %c0_96 = arith.constant 0 : index
    %c0_97 = arith.constant 0 : index
    %353 = vector.load %arg10[%c0_96, %c0_97] : memref<2x2xf32, #tpu.memory_space<vmem>>, vector<2x2xf32>
    tpu.vector_store %arg10[%c0_96, %c0_97], %352 {strides = array<i32>} : memref<2x2xf32, #tpu.memory_space<vmem>>, vector<2x2xf32>,
    return
  }
}

</mosaic_0001>

<bundles_post_ra>
// kernel: deberta_classifier_forward.1
= control target key start
LH: loop header
LB: loop body
LE: loop exit
PB: predicated region body
PF: predicated region fallthrough
CT: control target
= control target key end

     0   :  { %v3716_v2 = vmov 0   ;;  %v3717_v11 = vmov 0.0   ;;  %s4464_s0 = inlined_call_operand.vmem [shape: s32[16,1], index: 0, kind: input, shape index: {}]   ;;  %s4465_s1 = inlined_call_operand.vmem [shape: f32[100,32], index: 1, kind: input, shape index: {}]   ;;  %s4466_s2 = inlined_call_operand.vmem [shape: f32[16,32], index: 2, kind: input, shape index: {}]   ;;  %s4467_s3 = inlined_call_operand.vmem [shape: bf16[2,32,96], index: 3, kind: input, shape index: {}]   ;;  %s4468_s4 = inlined_call_operand.vmem [shape: bf16[2,32,32], index: 4, kind: input, shape index: {}]   ;;  %s4469_s5 = inlined_call_operand.vmem [shape: bf16[2,32,64], index: 5, kind: input, shape index: {}]   ;;  %s4470_s6 = inlined_call_operand.vmem [shape: bf16[2,64,32], index: 6, kind: input, shape index: {}]   ;;  %s4471_s7 = inlined_call_operand.vmem [shape: bf16[32,34], index: 7, kind: input, shape index: {}]   ;;  %s4472_s8 = inlined_call_operand.vmem [shape: f32[2,8,96], index: 8, kind: input, shape index: {}]   ;;  %s4473_s9 = inlined_call_operand.vmem [shape: f32[4,32], index: 9, kind: input, shape index: {}]   ;;  %s4474_s10 = inlined_call_operand.hbm [shape: f32[2,2], index: 10, kind: output, shape index: {}]  }
   0x1   :  { %v38_v0 = vld [vmem:[%s4464_s0] sm:$0xff]  ;;  %3544 = vset.pattern.permute.xlu0 %v3716_v2  ;;  %v55_v3 = vld [vmem:[%s4465_s1 + $0x8] sm:$0xff]  ;;  %v56_v4 = vld [vmem:[%s4465_s1 + $0x10] sm:$0xff]  ;;  %3228 = vmatprep.subr.bf16.mxu1 %v3717_v11 }
   0x2   :  { %v54_v1 = vld [vmem:[%s4465_s1] sm:$0xff]  ;;  %v57_v5 = vld [vmem:[%s4465_s1 + $0x18] sm:$0xff]  ;;  %43 = vperm.xlu0 %3544, %v38_v0   ;;  %v39_v8 = vld [vmem:[%s4464_s0 + $0x8] sm:$0xff] }
   0x3   :  { %v3508_v6 = vpack.c.bf16 %v55_v3, %v54_v1  ;;  %v3512_v7 = vpack.c.bf16 %v57_v5, %v56_v4  ;;  %v58_v9 = vld [vmem:[%s4465_s1 + $0x20] sm:$0xff]  ;;  %v59_v10 = vld [vmem:[%s4465_s1 + $0x28] sm:$0xff]  ;;  %v60_v12 = vld [vmem:[%s4465_s1 + $0x30] sm:$0xff] }
   0x4   :  { %v61_v13 = vld [vmem:[%s4465_s1 + $0x38] sm:$0xff]  ;;  %v3516_v14 = vpack.c.bf16 %v59_v10, %v58_v9  ;;  %v62_v15 = vld [vmem:[%s4465_s1 + $0x40] sm:$0xff]  ;;  %v63_v16 = vld [vmem:[%s4465_s1 + $0x48] sm:$0xff] }
   0x5   :  { %3509 = vmatprep.subr.bf16.mxu0 %v3508_v6  ;;  %v3520_v17 = vpack.c.bf16 %v61_v13, %v60_v12  ;;  %v64_v18 = vld [vmem:[%s4465_s1 + $0x50] sm:$0xff]  ;;  %v65_v19 = vld [vmem:[%s4465_s1 + $0x58] sm:$0xff]  ;;  %v3524_v20 = vpack.c.bf16 %v63_v16, %v62_v15 }
   0x6   :  { %3511 = vmatpush3.bf16.msra.mxu0 %v3508_v6  ;;  %46 = vperm.xlu0 %3544, %v39_v8   ;;  %v3528_v21 = vpack.c.bf16 %v65_v19, %v64_v18 }
   0x7   :  { %3513 = vmatprep.subr.bf16.mxu0 %v3512_v7 }
   0xa   :  { %3515 = vmatpush3.bf16.msra.mxu0 %v3512_v7 }
   0xb   :  { %3517 = vmatprep.subr.bf16.mxu0 %v3516_v14 }
   0xe   :  { %3519 = vmatpush3.bf16.msra.mxu0 %v3516_v14 }
   0xf   :  { %3521 = vmatprep.subr.bf16.mxu0 %v3520_v17 }
  0x12   :  { %3523 = vmatpush3.bf16.msra.mxu0 %v3520_v17 }
  0x13   :  { %3525 = vmatprep.subr.bf16.mxu0 %v3524_v20 }
  0x14   :  { %15 = vsyncpa [#allocation3], 0  ;;  %v66_v22 = vld [vmem:[%s4465_s1 + $0x60] sm:$0xf]  ;;  %vm76_vm0 = vcmask 1043456   ;;  %v40_v23 = vlaneseq  ;;  %vm69_vm1 = vcmask 818176  }
  0x15   :  { %v67_v29 = vld [vmem:[%s4466_s2] sm:$0xff]  ;;  %v68_v31 = vld [vmem:[%s4466_s2 + $0x8] sm:$0xff]  ;;  %vm155_vm4 = vcmask 261120   ;;  %vm3718_vm5 = vmmov 0   ;;  %s3719_s12 = smov 104   ;;  %s3720_s0 = smov 120  }
  0x16   :  { %3527 = vmatpush3.bf16.msra.mxu0 %v3524_v20  ;;  %v41_v24 = vand.u32 127, %v40_v23  ;;  %v3575_v47 = vld [vmem:[%s4467_s3] sm:$0xff]   ;;  %3232 = vmatprep.mubr.msk.bf16.mxu1 %vm3718_vm5, %v3717_v11  ;;  %v3576_v48 = vld [vmem:[%s4467_s3 + $0x8] sm:$0xff]   ;;  %v3856_v55 = vshrl.u32 %v40_v23, 7  ;;  %s3721_s13 = smov 112   ;;  %s3722_s14 = smov 96  }
  0x17   :  { %3529 = vmatprep.subr.bf16.mxu0 %v3528_v21  ;;  %3229 = vmatpush3.bf16.msra.mxu1 %v3575_v47  ;;  %v37_v57 = vld [vmem:[%s4473_s9] sm:$0xf]  ;;  %vm281_vm6 = vcmask 64512   ;;  %s3723_s15 = smov 64   ;;  %s3724_s16 = smov 8   ;;  %vm1190_vm7 = vcmask 130048  }
  0x18   :  { %3230 = vmatprep.subr.bf16.mxu1 %v3717_v11  ;;  %v3859_v56 = vsub.s32 0, %v3856_v55  ;;  %v3866_v61 = vsub.s32 1, %v3856_v55  ;;  %v3881_v6 = vld [vmem:[%s4472_s8] sm:$0xff]  ;;  %s3725_s21 = smov 16   ;;  %s3726_s1 = smov 24   ;;  %vm1193_vm8 = vcmask 195584  }
  0x19   :  { %vm1421_vm9 = vcmask 523264   ;;  %vm2835_vm10 = vcmask 1041409   ;;  %vm2956_vm11 = vcmask 9216  }
  0x1a   :  { %3531 = vmatpush3.bf16.msra.mxu0 %v3528_v21  ;;  %v186_v60 = vrot.slane %v37_v57, %v3859_v56  ;;  %v192_v1 = vrot.slane %v37_v57, %v3866_v61  ;;  %v204_v7 = vrot.slane %v3881_v6, %v3859_v56 }
  0x1b   :  { %3223 = vmatprep.subr.msk.mxu0 %vm76_vm0, %v66_v22  ;;  %3231 = vmatpush3.bf16.msra.mxu1 %v3576_v48 }
  0x1c   :  { %3236 = vmatprep.subr.bf16.mxu1 %v3717_v11 }
  0x1e   :  { %3224 = vmatpush3.msk.msra.mxu0 %vm76_vm0, %v66_v22 }
  0x1f   :  { %3254 = vmatprep.subr.bf16.mxu0 %v3717_v11 }
  0x81   :  { %v44_v25 = vpop.permute.xlu0 %43 }
  0x82   :  { %vm48_vm2 = vcmp.eq.s32.totalorder %v41_v24, %v44_v25 }
  0x83   :  { %v2972_v26 = vsel %vm48_vm2, 1.0, %v3717_v11 }
  0x84   :  { %3225 = vmatprep.mubr.msk.f32.mxu0 %vm69_vm1, %v2972_v26 }
  0x85   :  { %v47_v27 = vpop.permute.xlu0 %46 }
  0x86   :  { %vm49_vm3 = vcmp.eq.s32.totalorder %v41_v24, %v47_v27 }
  0x87   :  { %v2973_v28 = vsel %vm49_vm3, 1.0, %v3717_v11 }
  0x88   :  { %3226 = vmatmul.mubr.msk.f32.vlgmr.msra.gmra.mrb[0].mxu0 %vm69_vm1, %v2973_v28 }
  0x89   :  { %3256 = vmatprep.mubr.msk.bf16.mxu0 %vm3718_vm5, %v3717_v11 }
 0x15b   :  { %v3227_v30 = vpop.f32.mrb[0].mxu0 }
 0x15c   :  { %v146_v32 = vpop.f32.mrb[1].mxu0  ;;  %v152_v34 = vadd.f32 %v3227_v30, %v68_v31 }
 0x15d   :  { %v147_v33 = vadd.f32 %v146_v32, %v67_v29 }
 0x15e   :  { %v159_v36 = vsel %vm155_vm4, %v152_v34, 0.0 }
 0x15f   :  { %v156_v35 = vsel %vm155_vm4, %v147_v33, 0.0 }
 0x160   :  { %157 = vadd.xlane.f32.xlu1 %v156_v35 }
 0x164   :  { %160 = vadd.xlane.f32.xlu1 %v159_v36 }
 0x1ed   :  { %v158_v37 = vpop.xlane.xlu1 %157 }
 0x1ee   :  { %v163_v38 = vmul.f32 0.03125, %v158_v37 }
 0x1f0   :  { %v165_v39 = vsub.f32 %v147_v33, %v163_v38 }
 0x1f1   :  { %v161_v40 = vpop.xlane.xlu1 %160 }
 0x1f2   :  { %v164_v41 = vmul.f32 0.03125, %v161_v40  ;;  %v167_v42 = vmul.f32 %v165_v39, %v165_v39 }
 0x1f4   :  { %v166_v43 = vsub.f32 %v152_v34, %v164_v41  ;;  %v169_v44 = vsel %vm155_vm4, %v167_v42, 0.0 }
 0x1f5   :  { %170 = vadd.xlane.f32.xlu0 %v169_v44 }
 0x1f6   :  { %v168_v45 = vmul.f32 %v166_v43, %v166_v43 }
 0x1f8   :  { %v172_v46 = vsel %vm155_vm4, %v168_v45, 0.0 }
 0x1f9   :  { %173 = vadd.xlane.f32.xlu1 %v172_v46 }
 0x282   :  { %v171_v49 = vpop.xlane.xlu0 %170 }
 0x283   :  { %v175_v50 = vmul.f32 0.03125, %v171_v49 }
 0x285   :  { %v177_v51 = vadd.f32 1e-07, %v175_v50 }
 0x286   :  { %v174_v52 = vpop.xlane.xlu1 %173 }
 0x287   :  { %3597 = vrsqrt.f32 %v177_v51  ;;  %v176_v53 = vmul.f32 0.03125, %v174_v52 }
 0x289   :  { %v178_v54 = vadd.f32 1e-07, %v176_v53 }
 0x28b   :  { %3599 = vrsqrt.f32 %v178_v54 }
 0x291   :  { %v3598_v58 = vpop.eup %3597 }
 0x292   :  { %v181_v59 = vmul.f32 %v3598_v58, %v165_v39 }
 0x294   :  { %v187_v0 = vmul.f32 %v186_v60, %v181_v59 }
 0x295   :  { %v3600_v62 = vpop.eup %3599 }
 0x296   :  { %v182_v63 = vmul.f32 %v3600_v62, %v166_v43  ;;  %v3869_v3 = vadd.f32 %v192_v1, %v187_v0 }
 0x298   :  { %v188_v2 = vmul.f32 %v186_v60, %v182_v63 }
 0x29a   :  { %v3871_v4 = vadd.f32 %v192_v1, %v188_v2 }
 0x29c   :  { %v195_v5 = vpack.c.bf16 %v3871_v4, %v3869_v3 }
 0x29e   :  { %3233 = vmatmul.mubr.msk.bf16.vlgmr.msra.gmra.mrb[0].mxu1 %vm155_vm4, %v195_v5 }
 0x29f   :  { %3238 = vmatprep.mubr.msk.bf16.mxu1 %vm3718_vm5, %v3717_v11 }
 0x371   :  { %v254_v8 = vpop.f32.mrb[0].mxu1 }
 0x372   :  { %v255_v9 = vadd.f32 %v254_v8, %v204_v7  ;;  %v3234_v10 = vpop.f32.mrb[1].mxu1 }
 0x373   :  { %v257_v12 = vpop.f32.mrb[2].mxu1 }
 0x374   :  { %v3080_v13 = vpack.c.bf16 %v255_v9, %v255_v9  ;;  %v258_v14 = vadd.f32 %v257_v12, %v204_v7  ;;  %v3235_v15 = vpop.f32.mrb[3].mxu1 }
 0x376   :  { %275 = vrot.lane.b32.xlu0 %v3080_v13, %s3719_s12  ;;  %267 = vrot.lane.b32.xlu1 %v3080_v13, %s3720_s0  ;;  %v3887_v16 = vpack.c.bf16 %v258_v14, %v258_v14 }
 0x37a   :  { %269 = vrot.lane.b32.xlu1 %v3887_v16, %s3720_s0 }
 0x37e   :  { %271 = vrot.lane.b32.xlu1 %v3080_v13, %s3721_s13 }
 0x382   :  { %273 = vrot.lane.b32.xlu1 %v3887_v16, %s3721_s13 }
 0x386   :  { %277 = vrot.lane.b32.xlu1 %v3887_v16, %s3719_s12 }
 0x38a   :  { %279 = vrot.lane.b32.xlu1 %v3080_v13, %s3722_s14 }
 0x38e   :  { %328 = vrot.lane.b32.xlu1 %v3887_v16, %s3722_s14 }
 0x3e8   :  { %v268_v17 = vpop.permute.xlu1 %267  ;;  %v276_v23 = vpop.permute.xlu0 %275 }
 0x3e9   :  { %v3899_v18 = vcombine.low %v268_v17, %v268_v17  ;;  %v3911_v25 = vcombine.low %v276_v23, %v276_v23 }
 0x3eb   :  { %378 = vrot.lane.b32.xlu1 %v3899_v18, %s3722_s14 }
 0x3ec   :  { %v270_v19 = vpop.permute.xlu1 %269 }
 0x3ed   :  { %v3903_v20 = vcombine.low %v270_v19, %v270_v19 }
 0x3ef   :  { %428 = vrot.lane.b32.xlu1 %v3903_v20, %s3722_s14 }
 0x3f0   :  { %v272_v21 = vpop.permute.xlu1 %271 }
 0x3f1   :  { %v3907_v22 = vcombine.low %v272_v21, %v272_v21 }
 0x3f3   :  { %478 = vrot.lane.b32.xlu0 %v3907_v22, %s3722_s14 }
 0x3f4   :  { %v274_v24 = vpop.permute.xlu1 %273 }
 0x3f5   :  { %v3913_v26 = vcombine.low %v274_v24, %v274_v24 }
 0x3f7   :  { %578 = vrot.lane.b32.xlu0 %v3911_v25, %s3722_s14  ;;  %528 = vrot.lane.b32.xlu1 %v3913_v26, %s3722_s14 }
 0x3f8   :  { %v278_v27 = vpop.permute.xlu1 %277 }
 0x3f9   :  { %v3919_v28 = vcombine.low %v278_v27, %v278_v27 }
 0x3fb   :  { %628 = vrot.lane.b32.xlu1 %v3919_v28, %s3722_s14 }
 0x3fc   :  { %v280_v29 = vpop.permute.xlu1 %279 }
 0x3fd   :  { %v286_v30 = vsel %vm281_vm6, %v280_v29, 0 }
 0x3fe   :  { %3237 = vmatpush3.bf16.xpose.msra.mxu1 %v286_v30 }
 0x3ff   :  { %780 = vrot.lane.b32.xlu1 %v3080_v13, %s3723_s15  ;;  %3242 = vmatprep.subr.bf16.mxu1 %v3717_v11 }
 0x400   :  { %v329_v31 = vpop.permute.xlu1 %328 }
 0x401   :  { %v334_v32 = vsel %vm281_vm6, %v329_v31, 0 }
 0x405   :  { %3239 = vmatmul.mubr.msk.bf16.vlgmr.msra.gmra.mrb[4].mxu1 %vm281_vm6, %v3080_v13 }
 0x406   :  { %3243 = vmatpush3.bf16.xpose.msra.mxu1 %v334_v32  ;;  %3244 = vmatprep.mubr.msk.bf16.mxu1 %vm3718_vm5, %v3717_v11 }
 0x407   :  { %3248 = vmatprep.subr.bf16.mxu1 %v3717_v11 }
 0x40d   :  { %3245 = vmatmul.mubr.msk.bf16.vlgmr.msra.gmra.mrb[8].mxu1 %vm281_vm6, %v3887_v16 }
 0x40e   :  { %3250 = vmatprep.mubr.msk.bf16.mxu1 %vm3718_vm5, %v3717_v11 }
 0x45d   :  { %v379_v33 = vpop.permute.xlu1 %378 }
 0x45e   :  { %v384_v34 = vsel %vm281_vm6, %v379_v33, 0 }
 0x45f   :  { %3249 = vmatpush3.bf16.xpose.msra.mxu1 %v384_v34 }
 0x460   :  { %3260 = vmatprep.subr.bf16.mxu1 %v3717_v11 }
 0x461   :  { %v429_v35 = vpop.permute.xlu1 %428 }
 0x462   :  { %v434_v36 = vsel %vm281_vm6, %v429_v35, 0 }
 0x463   :  { %3255 = vmatpush3.bf16.xpose.msra.mxu0 %v434_v36 }
 0x464   :  { %3266 = vmatprep.subr.bf16.mxu0 %v3717_v11 }
 0x465   :  { %v479_v37 = vpop.permute.xlu0 %478 }
 0x466   :  { %v484_v38 = vsel %vm281_vm6, %v479_v37, 0  ;;  %3251 = vmatmul.mubr.msk.bf16.vlgmr.msra.gmra.mrb[12].mxu1 %vm281_vm6, %v268_v17 }
 0x467   :  { %3261 = vmatpush3.bf16.xpose.msra.mxu1 %v484_v38  ;;  %3262 = vmatprep.mubr.msk.bf16.mxu1 %vm3718_vm5, %v3717_v11 }
 0x468   :  { %3272 = vmatprep.subr.bf16.mxu1 %v3717_v11 }
 0x469   :  { %v529_v39 = vpop.permute.xlu1 %528  ;;  %v579_v41 = vpop.permute.xlu0 %578 }
 0x46a   :  { %v534_v40 = vsel %vm281_vm6, %v529_v39, 0  ;;  %3257 = vmatmul.mubr.msk.bf16.vlgmr.msra.gmra.mrb[4].mxu0 %vm281_vm6, %v270_v19  ;;  %v584_v43 = vsel %vm281_vm6, %v579_v41, 0 }
 0x46b   :  { %3267 = vmatpush3.bf16.xpose.msra.mxu0 %v534_v40  ;;  %3268 = vmatprep.mubr.msk.bf16.mxu0 %vm3718_vm5, %v3717_v11 }
 0x46c   :  { %3278 = vmatprep.subr.bf16.mxu0 %v3717_v11 }
 0x46d   :  { %v629_v42 = vpop.permute.xlu1 %628 }
 0x46e   :  { %3263 = vmatmul.mubr.msk.bf16.vlgmr.msra.gmra.mrb[16].mxu1 %vm281_vm6, %v272_v21  ;;  %v634_v44 = vsel %vm281_vm6, %v629_v42, 0 }
 0x46f   :  { %3273 = vmatpush3.bf16.xpose.msra.mxu1 %v584_v43  ;;  %3274 = vmatprep.mubr.msk.bf16.mxu1 %vm3718_vm5, %v3717_v11 }
 0x470   :  { %3284 = vmatprep.subr.bf16.mxu1 %v3717_v11 }
 0x471   :  { %v781_v45 = vpop.permute.xlu1 %780 }
 0x472   :  { %3269 = vmatmul.mubr.msk.bf16.vlgmr.msra.gmra.mrb[8].mxu0 %vm281_vm6, %v274_v24  ;;  %v786_v46 = vsel %vm76_vm0, %v781_v45, 0 }
 0x473   :  { %3279 = vmatpush3.bf16.xpose.msra.mxu0 %v634_v44  ;;  %3280 = vmatprep.mubr.msk.bf16.mxu0 %vm3718_vm5, %v3717_v11 }
 0x474   :  { %3290 = vmatprep.subr.bf16.mxu0 %v3717_v11 }
 0x476   :  { %3275 = vmatmul.mubr.msk.bf16.vlgmr.msra.gmra.mrb[20].mxu1 %vm281_vm6, %v276_v23 }
 0x477   :  { %3285 = vmatpush3.bf16.msra.mxu1 %v786_v46  ;;  %3286 = vmatprep.mubr.msk.bf16.mxu1 %vm3718_vm5, %v3717_v11 }
 0x478   :  { %3296 = vmatprep.subr.bf16.mxu1 %v3717_v11 }
 0x47a   :  { %3281 = vmatmul.mubr.msk.bf16.vlgmr.msra.gmra.mrb[12].mxu0 %vm281_vm6, %v278_v27 }
 0x47b   :  { %3292 = vmatprep.mubr.msk.bf16.mxu0 %vm3718_vm5, %v3717_v11 }
 0x4d8   :  { %v322_v47 = vpop.f32.mrb[4].mxu1 }
 0x4d9   :  { %v676_v48 = vmul.f32 0.35355338, %v322_v47  ;;  %v3240_v49 = vpop.f32.mrb[5].mxu1 }
 0x4da   :  { %v325_v50 = vpop.f32.mrb[6].mxu1 }
 0x4db   :  { %v3241_v51 = vpop.f32.mrb[7].mxu1  ;;  %v684_v52 = vsel %vm281_vm6, %v676_v48, -inf }
 0x4dc   :  { %685 = vmax.xlane.f32.xlu0 %v684_v52 }
 0x4e0   :  { %v370_v53 = vpop.f32.mrb[8].mxu1 }
 0x4e1   :  { %v677_v54 = vmul.f32 0.35355338, %v370_v53  ;;  %v3246_v57 = vpop.f32.mrb[9].mxu1 }
 0x4e2   :  { %v373_v58 = vpop.f32.mrb[10].mxu1 }
 0x4e3   :  { %v3247_v59 = vpop.f32.mrb[11].mxu1  ;;  %v687_v60 = vsel %vm281_vm6, %v677_v54, -inf }
 0x4e4   :  { %688 = vmax.xlane.f32.xlu1 %v687_v60 }
 0x539   :  { %v420_v62 = vpop.f32.mrb[12].mxu1 }
 0x53a   :  { %v678_v63 = vmul.f32 0.35355338, %v420_v62  ;;  %v3252_v0 = vpop.f32.mrb[13].mxu1 }
 0x53b   :  { %v423_v1 = vpop.f32.mrb[14].mxu1 }
 0x53c   :  { %v3253_v2 = vpop.f32.mrb[15].mxu1  ;;  %v690_v5 = vsel %vm281_vm6, %v678_v63, -inf }
 0x53d   :  { %v470_v7 = vpop.f32.mrb[4].mxu0  ;;  %691 = vmax.xlane.f32.xlu0 %v690_v5 }
 0x53e   :  { %v679_v8 = vmul.f32 0.35355338, %v470_v7  ;;  %v3258_v9 = vpop.f32.mrb[5].mxu0 }
 0x53f   :  { %v473_v10 = vpop.f32.mrb[6].mxu0 }
 0x540   :  { %v3259_v12 = vpop.f32.mrb[7].mxu0  ;;  %v693_v13 = vsel %vm281_vm6, %v679_v8, -inf }
 0x541   :  { %694 = vmax.xlane.f32.xlu0 %v693_v13  ;;  %v520_v14 = vpop.f32.mrb[16].mxu1 }
 0x542   :  { %v3971_v15 = vmul.f32 0.35355338, %v520_v14  ;;  %v3264_v17 = vpop.f32.mrb[17].mxu1 }
 0x543   :  { %v523_v19 = vpop.f32.mrb[18].mxu1 }
 0x544   :  { %v3265_v21 = vpop.f32.mrb[19].mxu1  ;;  %v696_v23 = vsel %vm281_vm6, %v3971_v15, -inf }
 0x545   :  { %v570_v24 = vpop.f32.mrb[8].mxu0  ;;  %697 = vmax.xlane.f32.xlu1 %v696_v23 }
 0x546   :  { %v3975_v27 = vmul.f32 0.35355338, %v570_v24  ;;  %v3270_v29 = vpop.f32.mrb[9].mxu0 }
 0x547   :  { %v573_v30 = vpop.f32.mrb[10].mxu0 }
 0x548   :  { %v3271_v31 = vpop.f32.mrb[11].mxu0  ;;  %v699_v32 = vsel %vm281_vm6, %v3975_v27, -inf }
 0x549   :  { %700 = vmax.xlane.f32.xlu0 %v699_v32  ;;  %v620_v33 = vpop.f32.mrb[20].mxu1 }
 0x54a   :  { %v682_v34 = vmul.f32 0.35355338, %v620_v33  ;;  %v3276_v35 = vpop.f32.mrb[21].mxu1 }
 0x54b   :  { %v623_v36 = vpop.f32.mrb[22].mxu1 }
 0x54c   :  { %v3277_v37 = vpop.f32.mrb[23].mxu1  ;;  %v702_v38 = vsel %vm281_vm6, %v682_v34, -inf }
 0x54d   :  { %v670_v39 = vpop.f32.mrb[12].mxu0  ;;  %703 = vmax.xlane.f32.xlu1 %v702_v38 }
 0x54e   :  { %v683_v40 = vmul.f32 0.35355338, %v670_v39  ;;  %v3282_v41 = vpop.f32.mrb[13].mxu0 }
 0x54f   :  { %v673_v42 = vpop.f32.mrb[14].mxu0 }
 0x550   :  { %v3283_v43 = vpop.f32.mrb[15].mxu0  ;;  %v705_v44 = vsel %vm281_vm6, %v683_v40, -inf }
 0x551   :  { %706 = vmax.xlane.f32.xlu0 %v705_v44 }
 0x55e   :  { %876 = vrot.lane.b32.xlu1 %v3899_v18, %s3723_s15 }
 0x562   :  { %924 = vrot.lane.b32.xlu1 %v3903_v20, %s3723_s15 }
 0x567   :  { %828 = vrot.lane.b32.xlu0 %v3887_v16, %s3723_s15 }
 0x569   :  { %v686_v45 = vpop.xlane.xlu0 %685 }
 0x56a   :  { %v708_v46 = vsub.f32 %v676_v48, %v686_v45 }
 0x56c   :  { %v716_v50 = vmul.f32 1.442695, %v708_v46 }
 0x56e   :  { %3601 = vpow2.f32 %v716_v50 }
 0x571   :  { %v689_v47 = vpop.xlane.xlu1 %688 }
 0x572   :  { %v709_v49 = vsub.f32 %v677_v54, %v689_v47 }
 0x574   :  { %v718_v51 = vmul.f32 1.442695, %v709_v49 }
 0x576   :  { %3603 = vpow2.f32 %v718_v51 }
 0x578   :  { %v3987_v52 = vpop.eup %3601 }
 0x579   :  { %v732_v18 = vsel %vm281_vm6, %v3987_v52, 0.0 }
 0x580   :  { %v3604_v53 = vpop.eup %3603 }
 0x581   :  { %v735_v57 = vsel %vm281_vm6, %v3604_v53, 0.0 }
 0x586   :  { %736 = vadd.xlane.f32.xlu0 %v735_v57  ;;  %733 = vadd.xlane.f32.xlu1 %v732_v18 }
 0x5ca   :  { %v692_v20 = vpop.xlane.xlu0 %691 }
 0x5cb   :  { %v710_v16 = vsub.f32 %v678_v63, %v692_v20 }
 0x5cd   :  { %v720_v58 = vmul.f32 1.442695, %v710_v16 }
 0x5ce   :  { %v695_v48 = vpop.xlane.xlu0 %694 }
 0x5cf   :  { %3605 = vpow2.f32 %v720_v58  ;;  %v711_v54 = vsub.f32 %v679_v8, %v695_v48 }
 0x5d1   :  { %v722_v59 = vmul.f32 1.442695, %v711_v54 }
 0x5d2   :  { %v698_v8 = vpop.xlane.xlu1 %697 }
 0x5d3   :  { %3607 = vpow2.f32 %v722_v59  ;;  %v712_v9 = vsub.f32 %v3971_v15, %v698_v8 }
 0x5d5   :  { %v724_v13 = vmul.f32 1.442695, %v712_v9 }
 0x5d6   :  { %v701_v62 = vpop.xlane.xlu0 %700 }
 0x5d7   :  { %v713_v12 = vsub.f32 %v3975_v27, %v701_v62  ;;  %3609 = vpow2.f32 %v724_v13 }
 0x5d9   :  { %v3992_v60 = vpop.eup %3605  ;;  %v726_v17 = vmul.f32 1.442695, %v713_v12 }
 0x5da   :  { %v738_v0 = vsel %vm281_vm6, %v3992_v60, 0.0  ;;  %v704_v10 = vpop.xlane.xlu1 %703 }
 0x5db   :  { %739 = vadd.xlane.f32.xlu1 %v738_v0  ;;  %v714_v14 = vsub.f32 %v682_v34, %v704_v10  ;;  %3611 = vpow2.f32 %v726_v17 }
 0x5dd   :  { %v3996_v1 = vpop.eup %3607  ;;  %v728_v19 = vmul.f32 1.442695, %v714_v14 }
 0x5de   :  { %v707_v2 = vpop.xlane.xlu0 %706  ;;  %v741_v5 = vsel %vm281_vm6, %v3996_v1, 0.0  ;;  %v877_v24 = vpop.permute.xlu1 %876 }
 0x5df   :  { %742 = vadd.xlane.f32.xlu0 %v741_v5  ;;  %v715_v21 = vsub.f32 %v683_v40, %v707_v2  ;;  %3613 = vpow2.f32 %v728_v19  ;;  %v882_v43 = vsel %vm76_vm0, %v877_v24, 0 }
 0x5e1   :  { %v730_v23 = vmul.f32 1.442695, %v715_v21 }
 0x5e2   :  { %v829_v63 = vpop.permute.xlu0 %828  ;;  %v925_v29 = vpop.permute.xlu1 %924 }
 0x5e3   :  { %v834_v7 = vsel %vm76_vm0, %v829_v63, 0  ;;  %3615 = vpow2.f32 %v730_v23  ;;  %v930_v42 = vsel %vm76_vm0, %v925_v29, 0 }
 0x5e4   :  { %3291 = vmatpush3.bf16.msra.mxu0 %v834_v7 }
 0x5e5   :  { %3302 = vmatprep.subr.bf16.mxu0 %v3717_v11 }
 0x5ec   :  { %1020 = vrot.lane.b32.xlu1 %v3913_v26, %s3723_s15  ;;  %v4008_v26 = vpop.eup %3609 }
 0x5ed   :  { %v744_v15 = vsel %vm281_vm6, %v4008_v26, 0.0 }
 0x5f5   :  { %972 = vrot.lane.b32.xlu0 %v3907_v22, %s3723_s15  ;;  %v4010_v22 = vpop.eup %3611 }
 0x5f6   :  { %v4014_v27 = vpop.eup %3613  ;;  %v747_v32 = vsel %vm281_vm6, %v4010_v22, 0.0 }
 0x5f7   :  { %v750_v33 = vsel %vm281_vm6, %v4014_v27, 0.0  ;;  %v4020_v34 = vpop.eup %3615 }
 0x5f8   :  { %v753_v35 = vsel %vm281_vm6, %v4020_v34, 0.0 }
 0x610   :  { %745 = vadd.xlane.f32.xlu1 %v744_v15 }
 0x613   :  { %v737_v30 = vpop.xlane.xlu0 %736  ;;  %v734_v31 = vpop.xlane.xlu1 %733 }
 0x614   :  { %3617 = vrcp.f32 %v737_v30  ;;  %748 = vadd.xlane.f32.xlu0 %v747_v32  ;;  %751 = vadd.xlane.f32.xlu1 %v750_v33 }
 0x615   :  { %3619 = vrcp.f32 %v734_v31 }
 0x618   :  { %754 = vadd.xlane.f32.xlu0 %v753_v35 }
 0x61e   :  { %v3618_v36 = vpop.eup %3617 }
 0x61f   :  { %v3620_v37 = vpop.eup %3619  ;;  %v765_v38 = vmul.f32 %v3618_v36, %v3604_v53  ;;  %v3577_v36 = vld [vmem:[%s4468_s4] sm:$0xff]  }
 0x620   :  { %v764_v39 = vmul.f32 %v3620_v37, %v3987_v52 }
 0x621   :  { %v773_v40 = vpack.c.bf16 %v765_v38, %v765_v38 }
 0x622   :  { %v772_v41 = vpack.c.bf16 %v764_v39, %v764_v39 }
 0x623   :  { %3293 = vmatmul.mubr.msk.bf16.vlgmr.msra.gmra.mrb[16].mxu0 %vm281_vm6, %v773_v40 }
 0x624   :  { %3287 = vmatmul.mubr.msk.bf16.vlgmr.msra.gmra.mrb[24].mxu1 %vm281_vm6, %v772_v41  ;;  %3303 = vmatpush3.bf16.msra.mxu0 %v930_v42  ;;  %v3578_v42 = vld [vmem:[%s4468_s4 + $0x8] sm:$0xff]  }
 0x625   :  { %3297 = vmatpush3.bf16.msra.mxu1 %v882_v43  ;;  %1116 = vrot.lane.b32.xlu1 %v3919_v28, %s3723_s15 }
 0x626   :  { %3298 = vmatprep.mubr.msk.bf16.mxu1 %vm3718_vm5, %v3717_v11  ;;  %3308 = vmatprep.subr.bf16.mxu1 %v3717_v11 }
 0x627   :  { %3304 = vmatprep.mubr.msk.bf16.mxu0 %vm3718_vm5, %v3717_v11  ;;  %3314 = vmatprep.subr.bf16.mxu0 %v3717_v11 }
 0x62e   :  { %1068 = vrot.lane.b32.xlu0 %v3911_v25, %s3723_s15 }
 0x668   :  { %v740_v44 = vpop.xlane.xlu1 %739 }
 0x669   :  { %3621 = vrcp.f32 %v740_v44 }
 0x66c   :  { %v743_v45 = vpop.xlane.xlu0 %742  ;;  %v1021_v53 = vpop.permute.xlu1 %1020 }
 0x66d   :  { %3623 = vrcp.f32 %v743_v45  ;;  %v1026_v57 = vsel %vm76_vm0, %v1021_v53, 0 }
 0x670   :  { %v973_v47 = vpop.permute.xlu0 %972 }
 0x671   :  { %v978_v52 = vsel %vm76_vm0, %v973_v47, 0 }
 0x673   :  { %v3622_v46 = vpop.eup %3621 }
 0x674   :  { %v766_v28 = vmul.f32 %v3622_v46, %v3992_v60 }
 0x676   :  { %v774_v49 = vpack.c.bf16 %v766_v28, %v766_v28 }
 0x677   :  { %v3624_v50 = vpop.eup %3623 }
 0x678   :  { %v767_v51 = vmul.f32 %v3624_v50, %v3996_v1  ;;  %3299 = vmatmul.mubr.msk.bf16.vlgmr.msra.gmra.mrb[28].mxu1 %vm281_vm6, %v774_v49 }
 0x679   :  { %3309 = vmatpush3.bf16.msra.mxu1 %v978_v52  ;;  %3310 = vmatprep.mubr.msk.bf16.mxu1 %vm3718_vm5, %v3717_v11 }
 0x67a   :  { %v775_v25 = vpack.c.bf16 %v767_v51, %v767_v51  ;;  %3320 = vmatprep.subr.bf16.mxu1 %v3717_v11 }
 0x67c   :  { %3305 = vmatmul.mubr.msk.bf16.vlgmr.msra.gmra.mrb[20].mxu0 %vm281_vm6, %v775_v25 }
 0x67d   :  { %3315 = vmatpush3.bf16.msra.mxu0 %v1026_v57  ;;  %3316 = vmatprep.mubr.msk.bf16.mxu0 %vm3718_vm5, %v3717_v11 }
 0x67e   :  { %3326 = vmatprep.subr.bf16.mxu0 %v3717_v11 }
 0x69d   :  { %v746_v18 = vpop.xlane.xlu1 %745 }
 0x69e   :  { %3625 = vrcp.f32 %v746_v18 }
 0x6a1   :  { %v749_v20 = vpop.xlane.xlu0 %748  ;;  %v752_v16 = vpop.xlane.xlu1 %751 }
 0x6a2   :  { %3627 = vrcp.f32 %v749_v20 }
 0x6a3   :  { %3629 = vrcp.f32 %v752_v16 }
 0x6a5   :  { %v755_v58 = vpop.xlane.xlu0 %754  ;;  %v1117_v5 = vpop.permute.xlu1 %1116 }
 0x6a6   :  { %3631 = vrcp.f32 %v755_v58  ;;  %v1122_v9 = vsel %vm76_vm0, %v1117_v5, 0 }
 0x6a8   :  { %v3626_v48 = vpop.eup %3625 }
 0x6a9   :  { %v768_v54 = vmul.f32 %v3626_v48, %v4008_v26  ;;  %v1069_v59 = vpop.permute.xlu0 %1068 }
 0x6aa   :  { %v1074_v2 = vsel %vm76_vm0, %v1069_v59, 0 }
 0x6ab   :  { %v776_v60 = vpack.c.bf16 %v768_v54, %v768_v54 }
 0x6ac   :  { %v3628_v62 = vpop.eup %3627 }
 0x6ad   :  { %v3630_v0 = vpop.eup %3629  ;;  %v769_v1 = vmul.f32 %v3628_v62, %v4010_v22  ;;  %3311 = vmatmul.mubr.msk.bf16.vlgmr.msra.gmra.mrb[32].mxu1 %vm281_vm6, %v776_v60 }
 0x6ae   :  { %3321 = vmatpush3.bf16.msra.mxu1 %v1074_v2  ;;  %3322 = vmatprep.mubr.msk.bf16.mxu1 %vm3718_vm5, %v3717_v11  ;;  %v770_v63 = vmul.f32 %v3630_v0, %v4014_v27 }
 0x6af   :  { %v777_v7 = vpack.c.bf16 %v769_v1, %v769_v1  ;;  %3332 = vmatprep.subr.bf16.mxu1 %v3717_v11 }
 0x6b0   :  { %v3632_v8 = vpop.eup %3631  ;;  %v778_v12 = vpack.c.bf16 %v770_v63, %v770_v63 }
 0x6b1   :  { %3317 = vmatmul.mubr.msk.bf16.vlgmr.msra.gmra.mrb[24].mxu0 %vm281_vm6, %v777_v7  ;;  %v771_v10 = vmul.f32 %v3632_v8, %v4020_v34 }
 0x6b2   :  { %3327 = vmatpush3.bf16.msra.mxu0 %v1122_v9  ;;  %3328 = vmatprep.mubr.msk.bf16.mxu0 %vm3718_vm5, %v3717_v11  ;;  %v1204_v9 = vrot.slane %v3881_v6, %v3866_v61 }
 0x6b3   :  { %3340 = vmatprep.subr.bf16.mxu0 %v3717_v11  ;;  %v779_v13 = vpack.c.bf16 %v771_v10, %v771_v10 }
 0x6b5   :  { %3323 = vmatmul.mubr.msk.bf16.vlgmr.msra.gmra.mrb[36].mxu1 %vm281_vm6, %v778_v12 }
 0x6b6   :  { %3336 = vmatprep.mubr.msk.bf16.mxu1 %vm3718_vm5, %v3717_v11  ;;  %3333 = vmatpush3.bf16.msra.mxu1 %v3577_v36 }
 0x6b7   :  { %3334 = vmatprep.subr.bf16.mxu1 %v3717_v11 }
 0x6b9   :  { %3329 = vmatmul.mubr.msk.bf16.vlgmr.msra.gmra.mrb[28].mxu0 %vm281_vm6, %v779_v13 }
 0x6ba   :  { %3344 = vmatprep.mubr.msk.bf16.mxu0 %vm3718_vm5, %v3717_v11  ;;  %3335 = vmatpush3.bf16.msra.mxu1 %v3578_v42  ;;  %v4108_v42 = vsub.s32 2, %v3856_v55 }
 0x6bb   :  { %3348 = vmatprep.subr.bf16.mxu1 %v3717_v11 }
 0x6f6   :  { %v870_v14 = vpop.f32.mrb[16].mxu0 }
 0x6f7   :  { %v822_v17 = vpop.f32.mrb[24].mxu1  ;;  %v3294_v19 = vpop.f32.mrb[17].mxu0 }
 0x6f8   :  { %v3288_v21 = vpop.f32.mrb[25].mxu1  ;;  %v873_v23 = vpop.f32.mrb[18].mxu0 }
 0x6f9   :  { %v825_v24 = vpop.f32.mrb[26].mxu1  ;;  %v3295_v26 = vpop.f32.mrb[19].mxu0 }
 0x6fa   :  { %v3289_v22 = vpop.f32.mrb[27].mxu1 }
 0x74b   :  { %v918_v29 = vpop.f32.mrb[28].mxu1 }
 0x74c   :  { %v3300_v15 = vpop.f32.mrb[29].mxu1 }
 0x74d   :  { %v921_v27 = vpop.f32.mrb[30].mxu1 }
 0x74e   :  { %v3301_v30 = vpop.f32.mrb[31].mxu1 }
 0x74f   :  { %v966_v31 = vpop.f32.mrb[20].mxu0 }
 0x750   :  { %v3545_v32 = vpack.i.bf16 %v966_v31, %v918_v29  ;;  %v3306_v33 = vpop.f32.mrb[21].mxu0 }
 0x751   :  { %v969_v34 = vpop.f32.mrb[22].mxu0 }
 0x752   :  { %v3307_v35 = vpop.f32.mrb[23].mxu0  ;;  %3546 = vrot.lane.b32.xlu0 %v3545_v32, %s3724_s16 }
 0x753   :  { %v3580_v35 = vld [vmem:[%s4469_s5 + $0x8] sm:$0xff]  }
 0x780   :  { %v1014_v37 = vpop.f32.mrb[32].mxu1 }
 0x781   :  { %v3312_v38 = vpop.f32.mrb[33].mxu1 }
 0x782   :  { %v1017_v39 = vpop.f32.mrb[34].mxu1 }
 0x783   :  { %v3313_v40 = vpop.f32.mrb[35].mxu1 }
 0x784   :  { %v1062_v41 = vpop.f32.mrb[24].mxu0 }
 0x785   :  { %v3550_v43 = vpack.i.bf16 %v1062_v41, %v1014_v37  ;;  %v3318_v44 = vpop.f32.mrb[25].mxu0 }
 0x786   :  { %v1065_v45 = vpop.f32.mrb[26].mxu0  ;;  %v4113_v44 = vsub.s32 3, %v3856_v55 }
 0x787   :  { %v3319_v46 = vpop.f32.mrb[27].mxu0  ;;  %3551 = vrot.lane.b32.xlu1 %v3550_v43, %s3725_s21  ;;  %v1292_v43 = vrot.slane %v3881_v6, %v4108_v42 }
 0x788   :  { %v1110_v28 = vpop.f32.mrb[36].mxu1 }
 0x789   :  { %v3324_v47 = vpop.f32.mrb[37].mxu1 }
 0x78a   :  { %v1113_v49 = vpop.f32.mrb[38].mxu1 }
 0x78b   :  { %v3325_v50 = vpop.f32.mrb[39].mxu1 }
 0x78c   :  { %v1158_v51 = vpop.f32.mrb[28].mxu0  ;;  %v1298_v50 = vrot.slane %v3881_v6, %v4113_v44 }
 0x78d   :  { %v3555_v52 = vpack.i.bf16 %v1158_v51, %v1110_v28  ;;  %v3330_v53 = vpop.f32.mrb[29].mxu0 }
 0x78e   :  { %v1161_v25 = vpop.f32.mrb[30].mxu0 }
 0x78f   :  { %v3331_v57 = vpop.f32.mrb[31].mxu0  ;;  %3556 = vrot.lane.b32.xlu0 %v3555_v52, %s3726_s1 }
 0x790   :  { %v3581_v57 = vld [vmem:[%s4470_s6] sm:$0xff]  }
 0x7c4   :  { %v3547_v18 = vpop.permute.xlu0 %3546 }
 0x7c5   :  { %v3549_v16 = vunpack.i.h.bf16 %v3547_v18  ;;  %v3548_v58 = vunpack.i.l.bf16 %v3547_v18  ;;  %v3582_v18 = vld [vmem:[%s4470_s6 + $0x8] sm:$0xff]  }
 0x7c7   :  { %v1189_v60 = vsel %vm281_vm6, %v870_v14, %v3549_v16  ;;  %v1188_v62 = vsel %vm281_vm6, %v822_v17, %v3548_v58  ;;  %v3584_v16 = vld [vmem:[%s4470_s6 + $0x18] sm:$0xff]   ;;  %v1308_v58 = vsub.s32 4, %v3856_v55 }
 0x7f9   :  { %v3552_v20 = vpop.permute.xlu1 %3551 }
 0x7fa   :  { %v3554_v48 = vunpack.i.h.bf16 %v3552_v20  ;;  %v3553_v54 = vunpack.i.l.bf16 %v3552_v20  ;;  %v3583_v20 = vld [vmem:[%s4470_s6 + $0x10] sm:$0xff]  }
 0x7fc   :  { %v1192_v2 = vsel %vm1190_vm7, %v1189_v60, %v3554_v48  ;;  %v1191_v5 = vsel %vm1190_vm7, %v1188_v62, %v3553_v54  ;;  %v1309_v48 = vrot.slane %v3881_v6, %v1308_v58 }
 0x801   :  { %v3557_v59 = vpop.permute.xlu0 %3556 }
 0x802   :  { %v3559_v0 = vunpack.i.h.bf16 %v3557_v59  ;;  %v3558_v1 = vunpack.i.l.bf16 %v3557_v59 }
 0x804   :  { %v1195_v63 = vsel %vm1193_vm8, %v1192_v2, %v3559_v0  ;;  %v1194_v7 = vsel %vm1193_vm8, %v1191_v5, %v3558_v1 }
 0x805   :  { %v1196_v8 = vpack.c.bf16 %v1195_v63, %v1194_v7 }
 0x807   :  { %3337 = vmatmul.mubr.msk.bf16.vlgmr.msra.gmra.mrb[40].mxu1 %vm155_vm4, %v1196_v8 }
 0x808   :  { %3356 = vmatprep.mubr.msk.bf16.mxu1 %vm3718_vm5, %v3717_v11  ;;  %3349 = vmatpush3.bf16.msra.mxu1 %v3581_v57 }
 0x809   :  { %3350 = vmatprep.subr.bf16.mxu1 %v3717_v11 }
 0x80c   :  { %3351 = vmatpush3.bf16.msra.mxu1 %v3582_v18 }
 0x80d   :  { %3352 = vmatprep.subr.bf16.mxu1 %v3717_v11 }
 0x810   :  { %3353 = vmatpush3.bf16.msra.mxu1 %v3583_v20 }
 0x811   :  { %3354 = vmatprep.subr.bf16.mxu1 %v3717_v11 }
 0x814   :  { %3355 = vmatpush3.bf16.msra.mxu1 %v3584_v16 }
 0x815   :  { %3374 = vmatprep.subr.bf16.mxu1 %v3717_v11 }
 0x8da   :  { %v1254_v10 = vpop.f32.mrb[40].mxu1 }
 0x8db   :  { %v1255_v12 = vadd.f32 %v1254_v10, %v1204_v9  ;;  %v3338_v13 = vpop.f32.mrb[41].mxu1 }
 0x8dc   :  { %v1257_v14 = vpop.f32.mrb[42].mxu1 }
 0x8dd   :  { %v1258_v17 = vadd.f32 %v1257_v14, %v1204_v9  ;;  %v3339_v19 = vpop.f32.mrb[43].mxu1  ;;  %v1261_v21 = vadd.f32 %v1255_v12, %v3869_v3 }
 0x8df   :  { %v1263_v23 = vsel %vm155_vm4, %v1261_v21, 0.0  ;;  %v1262_v24 = vadd.f32 %v1258_v17, %v3871_v4  ;;  %v3579_v4 = vld [vmem:[%s4469_s5] sm:$0xff]  }
 0x8e0   :  { %1264 = vadd.xlane.f32.xlu1 %v1263_v23  ;;  %3341 = vmatpush3.bf16.msra.mxu0 %v3579_v4 }
 0x8e1   :  { %v1266_v26 = vsel %vm155_vm4, %v1262_v24, 0.0  ;;  %3342 = vmatprep.subr.bf16.mxu0 %v3717_v11 }
 0x8e2   :  { %1267 = vadd.xlane.f32.xlu0 %v1266_v26 }
 0x8e4   :  { %3343 = vmatpush3.bf16.msra.mxu0 %v3580_v35 }
 0x8e5   :  { %3360 = vmatprep.subr.bf16.mxu0 %v3717_v11 }
 0x96d   :  { %v1265_v22 = vpop.xlane.xlu1 %1264 }
 0x96e   :  { %v1269_v29 = vmul.f32 0.03125, %v1265_v22 }
 0x96f   :  { %v1268_v15 = vpop.xlane.xlu0 %1267 }
 0x970   :  { %v1271_v27 = vsub.f32 %v1261_v21, %v1269_v29  ;;  %v1270_v30 = vmul.f32 0.03125, %v1268_v15 }
 0x972   :  { %v1272_v31 = vsub.f32 %v1262_v24, %v1270_v30  ;;  %v1273_v32 = vmul.f32 %v1271_v27, %v1271_v27 }
 0x974   :  { %v1275_v33 = vsel %vm155_vm4, %v1273_v32, 0.0  ;;  %v1274_v34 = vmul.f32 %v1272_v31, %v1272_v31 }
 0x975   :  { %1276 = vadd.xlane.f32.xlu0 %v1275_v33 }
 0x976   :  { %v1278_v3 = vsel %vm155_vm4, %v1274_v34, 0.0 }
 0x977   :  { %1279 = vadd.xlane.f32.xlu1 %v1278_v3 }
 0xa02   :  { %v1277_v36 = vpop.xlane.xlu0 %1276 }
 0xa03   :  { %v1281_v37 = vmul.f32 0.03125, %v1277_v36 }
 0xa04   :  { %v1280_v38 = vpop.xlane.xlu1 %1279 }
 0xa05   :  { %v1283_v39 = vadd.f32 1e-07, %v1281_v37  ;;  %v1282_v40 = vmul.f32 0.03125, %v1280_v38 }
 0xa07   :  { %3633 = vrsqrt.f32 %v1283_v39  ;;  %v1284_v41 = vadd.f32 1e-07, %v1282_v40 }
 0xa09   :  { %3635 = vrsqrt.f32 %v1284_v41 }
 0xa11   :  { %v3634_v45 = vpop.eup %3633 }
 0xa12   :  { %v1287_v46 = vmul.f32 %v3634_v45, %v1271_v27  ;;  %v1395_v27 = vsub.s32 5, %v3856_v55 }
 0xa13   :  { %v3636_v28 = vpop.eup %3635 }
 0xa14   :  { %v1293_v47 = vmul.f32 %v1292_v43, %v1287_v46  ;;  %v1288_v49 = vmul.f32 %v3636_v28, %v1272_v31  ;;  %v1396_v30 = vrot.slane %v3881_v6, %v1395_v27 }
 0xa16   :  { %v1294_v51 = vmul.f32 %v1292_v43, %v1288_v49  ;;  %v1299_v52 = vadd.f32 %v1298_v50, %v1293_v47 }
 0xa18   :  { %v1300_v53 = vadd.f32 %v1298_v50, %v1294_v51  ;;  %v3585_v51 = vld [vmem:[%s4467_s3 + $0x10] sm:$0xff]  }
 0xa1a   :  { %v1301_v25 = vpack.c.bf16 %v1300_v53, %v1299_v52 }
 0xa1c   :  { %3345 = vmatmul.mubr.msk.bf16.vlgmr.msra.gmra.mrb[32].mxu0 %vm155_vm4, %v1301_v25 }
 0xa1d   :  { %3364 = vmatprep.mubr.msk.bf16.mxu0 %vm3718_vm5, %v3717_v11  ;;  %3361 = vmatpush3.bf16.msra.mxu0 %v3585_v51 }
 0xa1e   :  { %3362 = vmatprep.subr.bf16.mxu0 %v3717_v11 }
 0xaef   :  { %v1359_v54 = vpop.f32.mrb[32].mxu0 }
 0xaf0   :  { %v1360_v59 = vadd.f32 %v1359_v54, %v1309_v48  ;;  %v3346_v60 = vpop.f32.mrb[33].mxu0 }
 0xaf1   :  { %v1362_v62 = vpop.f32.mrb[34].mxu0 }
 0xaf2   :  { %v1368_v0 = vmul.f32 0.044715, %v1360_v59  ;;  %v1363_v1 = vadd.f32 %v1362_v62, %v1309_v48  ;;  %v3347_v2 = vpop.f32.mrb[35].mxu0  ;;  %v1366_v23 = vmul.f32 0.5, %v1360_v59  ;;  %v1496_v48 = vsub.s32 6, %v3856_v55 }
 0xaf4   :  { %v1370_v5 = vmul.f32 %v1368_v0, %v1360_v59  ;;  %v1369_v63 = vmul.f32 0.044715, %v1363_v1  ;;  %v1367_v24 = vmul.f32 0.5, %v1363_v1  ;;  %v1497_v54 = vrot.slane %v3881_v6, %v1496_v48 }
 0xaf6   :  { %v1372_v7 = vmul.f32 %v1370_v5, %v1360_v59  ;;  %v1371_v8 = vmul.f32 %v1369_v63, %v1363_v1 }
 0xaf8   :  { %v1374_v9 = vadd.f32 %v1372_v7, %v1360_v59  ;;  %v1373_v10 = vmul.f32 %v1371_v8, %v1363_v1  ;;  %v1502_v59 = vsub.s32 7, %v3856_v55 }
 0xafa   :  { %v1376_v12 = vmul.f32 0.7978846, %v1374_v9  ;;  %v1375_v13 = vadd.f32 %v1373_v10, %v1363_v1  ;;  %v1503_v5 = vrot.slane %v3881_v6, %v1502_v59  ;;  %v4179_v10 = vld [vmem:[%s4472_s8 + $0x8] sm:$0xff] }
 0xafb   :  { %v1517_v6 = vrot.slane %v4179_v10, %v3859_v56 }
 0xafc   :  { %3637 = vtanh.f32 %v1376_v12  ;;  %v1377_v14 = vmul.f32 0.7978846, %v1375_v13 }
 0xafe   :  { %3639 = vtanh.f32 %v1377_v14 }
 0xb06   :  { %v3638_v17 = vpop.eup %3637 }
 0xb07   :  { %v1380_v19 = vadd.f32 1.0, %v3638_v17 }
 0xb08   :  { %v3640_v21 = vpop.eup %3639 }
 0xb09   :  { %v1381_v26 = vadd.f32 1.0, %v3640_v21  ;;  %v1382_v22 = vmul.f32 %v1380_v19, %v1366_v23 }
 0xb0b   :  { %v1383_v29 = vmul.f32 %v1381_v26, %v1367_v24 }
 0xb0d   :  { %v1384_v15 = vpack.c.bf16 %v1383_v29, %v1382_v22 }
 0xb0f   :  { %3357 = vmatmul.mubr.msk.bf16.vlgmr.msra.gmra.mrb[44].mxu1 %vm1421_vm9, %v1384_v15 }
 0xb10   :  { %3376 = vmatprep.mubr.msk.bf16.mxu1 %vm3718_vm5, %v3717_v11 }
 0xbe2   :  { %v1459_v31 = vpop.f32.mrb[44].mxu1 }
 0xbe3   :  { %v1460_v32 = vadd.f32 %v1459_v31, %v1396_v30  ;;  %v3358_v33 = vpop.f32.mrb[45].mxu1 }
 0xbe4   :  { %v1462_v34 = vpop.f32.mrb[46].mxu1 }
 0xbe5   :  { %v1463_v3 = vadd.f32 %v1462_v34, %v1396_v30  ;;  %v3359_v4 = vpop.f32.mrb[47].mxu1  ;;  %v1466_v35 = vadd.f32 %v1460_v32, %v1299_v52  ;;  %v3586_v52 = vld [vmem:[%s4467_s3 + $0x18] sm:$0xff]  }
 0xbe6   :  { %3363 = vmatpush3.bf16.msra.mxu0 %v3586_v52 }
 0xbe7   :  { %v1468_v36 = vsel %vm155_vm4, %v1466_v35, 0.0  ;;  %v1467_v37 = vadd.f32 %v1463_v3, %v1300_v53  ;;  %3368 = vmatprep.subr.bf16.mxu0 %v3717_v11 }
 0xbe8   :  { %1469 = vadd.xlane.f32.xlu0 %v1468_v36 }
 0xbe9   :  { %v1471_v38 = vsel %vm155_vm4, %v1467_v37, 0.0 }
 0xbea   :  { %1472 = vadd.xlane.f32.xlu1 %v1471_v38 }
 0xc75   :  { %v1470_v39 = vpop.xlane.xlu0 %1469 }
 0xc76   :  { %v1474_v40 = vmul.f32 0.03125, %v1470_v39 }
 0xc77   :  { %v1473_v41 = vpop.xlane.xlu1 %1472 }
 0xc78   :  { %v1476_v43 = vsub.f32 %v1466_v35, %v1474_v40  ;;  %v1475_v45 = vmul.f32 0.03125, %v1473_v41 }
 0xc7a   :  { %v1477_v46 = vsub.f32 %v1467_v37, %v1475_v45  ;;  %v1478_v28 = vmul.f32 %v1476_v43, %v1476_v43 }
 0xc7c   :  { %v1480_v47 = vsel %vm155_vm4, %v1478_v28, 0.0  ;;  %v1479_v49 = vmul.f32 %v1477_v46, %v1477_v46 }
 0xc7d   :  { %1481 = vadd.xlane.f32.xlu0 %v1480_v47 }
 0xc7e   :  { %v1483_v50 = vsel %vm155_vm4, %v1479_v49, 0.0 }
 0xc7f   :  { %1484 = vadd.xlane.f32.xlu1 %v1483_v50 }
 0xd0a   :  { %v1482_v53 = vpop.xlane.xlu0 %1481 }
 0xd0b   :  { %v1486_v25 = vmul.f32 0.03125, %v1482_v53 }
 0xd0c   :  { %v1485_v57 = vpop.xlane.xlu1 %1484 }
 0xd0d   :  { %v1488_v18 = vadd.f32 1e-07, %v1486_v25  ;;  %v1487_v20 = vmul.f32 0.03125, %v1485_v57 }
 0xd0f   :  { %3641 = vrsqrt.f32 %v1488_v18  ;;  %v1489_v16 = vadd.f32 1e-07, %v1487_v20 }
 0xd11   :  { %3643 = vrsqrt.f32 %v1489_v16 }
 0xd19   :  { %v3642_v60 = vpop.eup %3641 }
 0xd1a   :  { %v1492_v62 = vmul.f32 %v3642_v60, %v1476_v43 }
 0xd1b   :  { %v3644_v0 = vpop.eup %3643 }
 0xd1c   :  { %v1498_v1 = vmul.f32 %v1497_v54, %v1492_v62  ;;  %v1493_v2 = vmul.f32 %v3644_v0, %v1477_v46 }
 0xd1e   :  { %v1499_v63 = vmul.f32 %v1497_v54, %v1493_v2  ;;  %v4167_v7 = vadd.f32 %v1503_v5, %v1498_v1 }
 0xd20   :  { %v4169_v8 = vadd.f32 %v1503_v5, %v1499_v63 }
 0xd22   :  { %v1506_v9 = vpack.c.bf16 %v4169_v8, %v4167_v7 }
 0xd24   :  { %3365 = vmatmul.mubr.msk.bf16.vlgmr.msra.gmra.mrb[36].mxu0 %vm155_vm4, %v1506_v9 }
 0xd25   :  { %3370 = vmatprep.mubr.msk.bf16.mxu0 %vm3718_vm5, %v3717_v11 }
 0xdf7   :  { %v1567_v12 = vpop.f32.mrb[36].mxu0 }
 0xdf8   :  { %v1568_v13 = vadd.f32 %v1567_v12, %v1517_v6  ;;  %v3366_v14 = vpop.f32.mrb[37].mxu0 }
 0xdf9   :  { %v1570_v17 = vpop.f32.mrb[38].mxu0 }
 0xdfa   :  { %v3082_v19 = vpack.c.bf16 %v1568_v13, %v1568_v13  ;;  %v1571_v21 = vadd.f32 %v1570_v17, %v1517_v6  ;;  %v3367_v23 = vpop.f32.mrb[39].mxu0 }
 0xdfc   :  { %v3083_v24 = vpack.c.bf16 %v1571_v21, %v1571_v21  ;;  %1580 = vrot.lane.b32.xlu0 %v3082_v19, %s3720_s0 }
 0xdfe   :  { %1582 = vrot.lane.b32.xlu1 %v3083_v24, %s3720_s0 }
 0xe00   :  { %1586 = vrot.lane.b32.xlu0 %v3083_v24, %s3721_s13 }
 0xe02   :  { %1584 = vrot.lane.b32.xlu1 %v3082_v19, %s3721_s13 }
 0xe04   :  { %1590 = vrot.lane.b32.xlu0 %v3083_v24, %s3719_s12 }
 0xe06   :  { %1588 = vrot.lane.b32.xlu1 %v3082_v19, %s3719_s12 }
 0xe08   :  { %1640 = vrot.lane.b32.xlu0 %v3083_v24, %s3722_s14 }
 0xe0a   :  { %1592 = vrot.lane.b32.xlu1 %v3082_v19, %s3722_s14 }
 0xe6e   :  { %v1581_v56 = vpop.permute.xlu0 %1580 }
 0xe6f   :  { %v4191_v26 = vcombine.low %v1581_v56, %v1581_v56 }
 0xe70   :  { %v1583_v22 = vpop.permute.xlu1 %1582 }
 0xe71   :  { %v4193_v29 = vcombine.low %v1583_v22, %v1583_v22  ;;  %1690 = vrot.lane.b32.xlu1 %v4191_v26, %s3722_s14 }
 0xe72   :  { %v1587_v15 = vpop.permute.xlu0 %1586 }
 0xe73   :  { %1740 = vrot.lane.b32.xlu0 %v4193_v29, %s3722_s14  ;;  %v4199_v31 = vcombine.low %v1587_v15, %v1587_v15 }
 0xe74   :  { %v1585_v30 = vpop.permute.xlu1 %1584 }
 0xe75   :  { %v4201_v32 = vcombine.low %v1585_v30, %v1585_v30 }
 0xe76   :  { %v1591_v33 = vpop.permute.xlu0 %1590 }
 0xe77   :  { %1840 = vrot.lane.b32.xlu0 %v4199_v31, %s3722_s14  ;;  %1790 = vrot.lane.b32.xlu1 %v4201_v32, %s3722_s14  ;;  %v4207_v3 = vcombine.low %v1591_v33, %v1591_v33 }
 0xe78   :  { %v1589_v34 = vpop.permute.xlu1 %1588 }
 0xe79   :  { %v4209_v4 = vcombine.low %v1589_v34, %v1589_v34 }
 0xe7a   :  { %v1641_v35 = vpop.permute.xlu0 %1640 }
 0xe7b   :  { %v1646_v36 = vsel %vm281_vm6, %v1641_v35, 0  ;;  %1940 = vrot.lane.b32.xlu0 %v4207_v3, %s3722_s14  ;;  %1890 = vrot.lane.b32.xlu1 %v4209_v4, %s3722_s14 }
 0xe7c   :  { %3375 = vmatpush3.bf16.xpose.msra.mxu1 %v1646_v36  ;;  %v1593_v37 = vpop.permute.xlu1 %1592 }
 0xe7d   :  { %v1598_v38 = vsel %vm281_vm6, %v1593_v37, 0  ;;  %3386 = vmatprep.subr.bf16.mxu1 %v3717_v11 }
 0xe7e   :  { %3369 = vmatpush3.bf16.xpose.msra.mxu0 %v1598_v38 }
 0xe7f   :  { %2092 = vrot.lane.b32.xlu0 %v3082_v19, %s3723_s15  ;;  %2140 = vrot.lane.b32.xlu1 %v3083_v24, %s3723_s15 }
 0xe80   :  { %3380 = vmatprep.subr.bf16.mxu0 %v3717_v11 }
 0xe83   :  { %3377 = vmatmul.mubr.msk.bf16.vlgmr.msra.gmra.mrb[48].mxu1 %vm281_vm6, %v3083_v24 }
 0xe84   :  { %3388 = vmatprep.mubr.msk.bf16.mxu1 %vm3718_vm5, %v3717_v11 }
 0xe85   :  { %3371 = vmatmul.mubr.msk.bf16.vlgmr.msra.gmra.mrb[40].mxu0 %vm281_vm6, %v3082_v19 }
 0xe86   :  { %3382 = vmatprep.mubr.msk.bf16.mxu0 %vm3718_vm5, %v3717_v11 }
 0xee3   :  { %v1691_v39 = vpop.permute.xlu1 %1690 }
 0xee4   :  { %v1696_v40 = vsel %vm281_vm6, %v1691_v39, 0 }
 0xee5   :  { %v1741_v41 = vpop.permute.xlu0 %1740  ;;  %3381 = vmatpush3.bf16.xpose.msra.mxu0 %v1696_v40 }
 0xee6   :  { %v1746_v43 = vsel %vm281_vm6, %v1741_v41, 0  ;;  %3392 = vmatprep.subr.bf16.mxu0 %v3717_v11 }
 0xee7   :  { %3387 = vmatpush3.bf16.xpose.msra.mxu1 %v1746_v43 }
 0xee8   :  { %3398 = vmatprep.subr.bf16.mxu1 %v3717_v11 }
 0xee9   :  { %v1791_v45 = vpop.permute.xlu1 %1790  ;;  %v1841_v46 = vpop.permute.xlu0 %1840 }
 0xeea   :  { %v1796_v28 = vsel %vm281_vm6, %v1791_v45, 0  ;;  %v1846_v47 = vsel %vm281_vm6, %v1841_v46, 0 }
 0xeec   :  { %3383 = vmatmul.mubr.msk.bf16.vlgmr.msra.gmra.mrb[44].mxu0 %vm281_vm6, %v1581_v56 }
 0xeed   :  { %3393 = vmatpush3.bf16.xpose.msra.mxu0 %v1796_v28  ;;  %3394 = vmatprep.mubr.msk.bf16.mxu0 %vm3718_vm5, %v3717_v11  ;;  %v1891_v49 = vpop.permute.xlu1 %1890  ;;  %v1941_v50 = vpop.permute.xlu0 %1940 }
 0xeee   :  { %3389 = vmatmul.mubr.msk.bf16.vlgmr.msra.gmra.mrb[52].mxu1 %vm281_vm6, %v1583_v22  ;;  %3404 = vmatprep.subr.bf16.mxu0 %v3717_v11  ;;  %v1896_v51 = vsel %vm281_vm6, %v1891_v49, 0  ;;  %v1946_v52 = vsel %vm281_vm6, %v1941_v50, 0 }
 0xeef   :  { %3399 = vmatpush3.bf16.xpose.msra.mxu1 %v1846_v47  ;;  %3400 = vmatprep.mubr.msk.bf16.mxu1 %vm3718_vm5, %v3717_v11 }
 0xef0   :  { %3410 = vmatprep.subr.bf16.mxu1 %v3717_v11 }
 0xef1   :  { %v2093_v53 = vpop.permute.xlu0 %2092  ;;  %v2141_v25 = vpop.permute.xlu1 %2140 }
 0xef2   :  { %v2098_v57 = vsel %vm76_vm0, %v2093_v53, 0  ;;  %v2146_v18 = vsel %vm76_vm0, %v2141_v25, 0 }
 0xef4   :  { %3395 = vmatmul.mubr.msk.bf16.vlgmr.msra.gmra.mrb[48].mxu0 %vm281_vm6, %v1585_v30 }
 0xef5   :  { %3405 = vmatpush3.bf16.xpose.msra.mxu0 %v1896_v51  ;;  %3406 = vmatprep.mubr.msk.bf16.mxu0 %vm3718_vm5, %v3717_v11 }
 0xef6   :  { %3401 = vmatmul.mubr.msk.bf16.vlgmr.msra.gmra.mrb[56].mxu1 %vm281_vm6, %v1587_v15  ;;  %3416 = vmatprep.subr.bf16.mxu0 %v3717_v11 }
 0xef7   :  { %3411 = vmatpush3.bf16.xpose.msra.mxu1 %v1946_v52  ;;  %3412 = vmatprep.mubr.msk.bf16.mxu1 %vm3718_vm5, %v3717_v11 }
 0xef8   :  { %3422 = vmatprep.subr.bf16.mxu1 %v3717_v11 }
 0xefc   :  { %3407 = vmatmul.mubr.msk.bf16.vlgmr.msra.gmra.mrb[52].mxu0 %vm281_vm6, %v1589_v34 }
 0xefd   :  { %3417 = vmatpush3.bf16.msra.mxu0 %v2098_v57  ;;  %3418 = vmatprep.mubr.msk.bf16.mxu0 %vm3718_vm5, %v3717_v11 }
 0xefe   :  { %3413 = vmatmul.mubr.msk.bf16.vlgmr.msra.gmra.mrb[60].mxu1 %vm281_vm6, %v1591_v33  ;;  %3428 = vmatprep.subr.bf16.mxu0 %v3717_v11 }
 0xeff   :  { %3423 = vmatpush3.bf16.msra.mxu1 %v2146_v18  ;;  %3424 = vmatprep.mubr.msk.bf16.mxu1 %vm3718_vm5, %v3717_v11 }
 0xf00   :  { %3434 = vmatprep.subr.bf16.mxu1 %v3717_v11 }
 0xf56   :  { %v1682_v20 = vpop.f32.mrb[48].mxu1 }
 0xf57   :  { %v1989_v16 = vmul.f32 0.35355338, %v1682_v20  ;;  %v3378_v54 = vpop.f32.mrb[49].mxu1 }
 0xf58   :  { %v1634_v60 = vpop.f32.mrb[40].mxu0  ;;  %v1685_v62 = vpop.f32.mrb[50].mxu1 }
 0xf59   :  { %v1988_v0 = vmul.f32 0.35355338, %v1634_v60  ;;  %v3372_v1 = vpop.f32.mrb[41].mxu0  ;;  %v3379_v2 = vpop.f32.mrb[51].mxu1  ;;  %v1999_v5 = vsel %vm281_vm6, %v1989_v16, -inf }
 0xf5a   :  { %v1637_v63 = vpop.f32.mrb[42].mxu0  ;;  %2000 = vmax.xlane.f32.xlu0 %v1999_v5 }
 0xf5b   :  { %v3373_v9 = vpop.f32.mrb[43].mxu0  ;;  %v1996_v6 = vsel %vm281_vm6, %v1988_v0, -inf }
 0xf5c   :  { %1997 = vmax.xlane.f32.xlu1 %v1996_v6 }
 0xfbf   :  { %v1732_v12 = vpop.f32.mrb[44].mxu0 }
 0xfc0   :  { %v1990_v13 = vmul.f32 0.35355338, %v1732_v12  ;;  %v3384_v14 = vpop.f32.mrb[45].mxu0 }
 0xfc1   :  { %v1735_v17 = vpop.f32.mrb[46].mxu0  ;;  %v1782_v19 = vpop.f32.mrb[52].mxu1 }
 0xfc2   :  { %v1991_v21 = vmul.f32 0.35355338, %v1782_v19  ;;  %v3385_v23 = vpop.f32.mrb[47].mxu0  ;;  %v3390_v24 = vpop.f32.mrb[53].mxu1  ;;  %v2002_v56 = vsel %vm281_vm6, %v1990_v13, -inf }
 0xfc3   :  { %2003 = vmax.xlane.f32.xlu0 %v2002_v56  ;;  %v1785_v22 = vpop.f32.mrb[54].mxu1 }
 0xfc4   :  { %v3391_v15 = vpop.f32.mrb[55].mxu1  ;;  %v2005_v30 = vsel %vm281_vm6, %v1991_v21, -inf }
 0xfc5   :  { %2006 = vmax.xlane.f32.xlu1 %v2005_v30 }
 0xfc7   :  { %v1832_v33 = vpop.f32.mrb[48].mxu0 }
 0xfc8   :  { %v4265_v34 = vmul.f32 0.35355338, %v1832_v33  ;;  %v3396_v35 = vpop.f32.mrb[49].mxu0 }
 0xfc9   :  { %v1835_v36 = vpop.f32.mrb[50].mxu0  ;;  %v1882_v37 = vpop.f32.mrb[56].mxu1 }
 0xfca   :  { %v1993_v38 = vmul.f32 0.35355338, %v1882_v37  ;;  %v3397_v39 = vpop.f32.mrb[51].mxu0  ;;  %v3402_v40 = vpop.f32.mrb[57].mxu1  ;;  %v2008_v41 = vsel %vm281_vm6, %v4265_v34, -inf }
 0xfcb   :  { %2009 = vmax.xlane.f32.xlu0 %v2008_v41  ;;  %v1885_v43 = vpop.f32.mrb[58].mxu1 }
 0xfcc   :  { %v3403_v45 = vpop.f32.mrb[59].mxu1  ;;  %v2011_v46 = vsel %vm281_vm6, %v1993_v38, -inf }
 0xfcd   :  { %2012 = vmax.xlane.f32.xlu1 %v2011_v46 }
 0xfcf   :  { %v1932_v28 = vpop.f32.mrb[52].mxu0 }
 0xfd0   :  { %v4270_v47 = vmul.f32 0.35355338, %v1932_v28  ;;  %v3408_v49 = vpop.f32.mrb[53].mxu0 }
 0xfd1   :  { %v1935_v50 = vpop.f32.mrb[54].mxu0  ;;  %v1982_v51 = vpop.f32.mrb[60].mxu1 }
 0xfd2   :  { %v1995_v52 = vmul.f32 0.35355338, %v1982_v51  ;;  %v3409_v53 = vpop.f32.mrb[55].mxu0  ;;  %v3414_v25 = vpop.f32.mrb[61].mxu1  ;;  %v2014_v57 = vsel %vm281_vm6, %v4270_v47, -inf }
 0xfd3   :  { %2015 = vmax.xlane.f32.xlu0 %v2014_v57  ;;  %v1985_v18 = vpop.f32.mrb[62].mxu1 }
 0xfd4   :  { %v3415_v20 = vpop.f32.mrb[63].mxu1  ;;  %v2017_v54 = vsel %vm281_vm6, %v1995_v52, -inf }
 0xfd5   :  { %2018 = vmax.xlane.f32.xlu1 %v2017_v54 }
 0xfe6   :  { %2188 = vrot.lane.b32.xlu1 %v4191_v26, %s3723_s15 }
 0xfe7   :  { %v2001_v62 = vpop.xlane.xlu0 %2000 }
 0xfe8   :  { %v2021_v2 = vsub.f32 %v1989_v16, %v2001_v62 }
 0xfe9   :  { %2236 = vrot.lane.b32.xlu0 %v4193_v29, %s3723_s15  ;;  %v1998_v60 = vpop.xlane.xlu1 %1997 }
 0xfea   :  { %v2020_v1 = vsub.f32 %v1988_v0, %v1998_v60  ;;  %v2030_v63 = vmul.f32 1.442695, %v2021_v2 }
 0xfec   :  { %v2028_v5 = vmul.f32 1.442695, %v2020_v1 }
 0xfee   :  { %3645 = vpow2.f32 %v2028_v5 }
 0xfef   :  { %3647 = vpow2.f32 %v2030_v63 }
 0xff8   :  { %v3646_v9 = vpop.eup %3645 }
 0xff9   :  { %v3648_v6 = vpop.eup %3647  ;;  %v2044_v12 = vsel %vm281_vm6, %v3646_v9, 0.0 }
 0xffa   :  { %v2047_v14 = vsel %vm281_vm6, %v3648_v6, 0.0 }
0x1008   :  { %2045 = vadd.xlane.f32.xlu0 %v2044_v12 }
0x100a   :  { %2048 = vadd.xlane.f32.xlu1 %v2047_v14 }
0x101b   :  { %2284 = vrot.lane.b32.xlu1 %v4201_v32, %s3723_s15 }
0x1050   :  { %v2004_v26 = vpop.xlane.xlu0 %2003 }
0x1051   :  { %v2022_v29 = vsub.f32 %v1990_v13, %v2004_v26 }
0x1052   :  { %v2007_v17 = vpop.xlane.xlu1 %2006 }
0x1053   :  { %v2032_v0 = vmul.f32 1.442695, %v2022_v29  ;;  %v2023_v16 = vsub.f32 %v1991_v21, %v2007_v17 }
0x1055   :  { %3649 = vpow2.f32 %v2032_v0  ;;  %v2034_v19 = vmul.f32 1.442695, %v2023_v16 }
0x1057   :  { %3651 = vpow2.f32 %v2034_v19 }
0x1058   :  { %v2010_v39 = vpop.xlane.xlu0 %2009 }
0x1059   :  { %v2024_v40 = vsub.f32 %v4265_v34, %v2010_v39 }
0x105a   :  { %v2013_v23 = vpop.xlane.xlu1 %2012 }
0x105b   :  { %v2025_v24 = vsub.f32 %v1993_v38, %v2013_v23  ;;  %v2036_v43 = vmul.f32 1.442695, %v2024_v40 }
0x105d   :  { %v2038_v56 = vmul.f32 1.442695, %v2025_v24 }
0x105f   :  { %v4283_v22 = vpop.eup %3649  ;;  %3653 = vpow2.f32 %v2038_v56 }
0x1060   :  { %v2050_v15 = vsel %vm281_vm6, %v4283_v22, 0.0  ;;  %v2016_v41 = vpop.xlane.xlu0 %2015 }
0x1061   :  { %v4287_v30 = vpop.eup %3651  ;;  %2051 = vadd.xlane.f32.xlu0 %v2050_v15  ;;  %v2026_v45 = vsub.f32 %v4270_v47, %v2016_v41 }
0x1062   :  { %v2019_v32 = vpop.xlane.xlu1 %2018  ;;  %v2053_v13 = vsel %vm281_vm6, %v4287_v30, 0.0 }
0x1063   :  { %v2027_v21 = vsub.f32 %v1995_v52, %v2019_v32  ;;  %2054 = vadd.xlane.f32.xlu1 %v2053_v13  ;;  %v2040_v46 = vmul.f32 1.442695, %v2026_v45 }
0x1064   :  { %v2237_v28 = vpop.permute.xlu0 %2236 }
0x1065   :  { %v2042_v33 = vmul.f32 1.442695, %v2027_v21  ;;  %v2242_v60 = vsel %vm76_vm0, %v2237_v28, 0 }
0x1066   :  { %v2189_v50 = vpop.permute.xlu1 %2188 }
0x1067   :  { %3655 = vpow2.f32 %v2042_v33  ;;  %v2194_v20 = vsel %vm76_vm0, %v2189_v50, 0 }
0x1068   :  { %3657 = vpow2.f32 %v2036_v43 }
0x1069   :  { %v4291_v35 = vpop.eup %3653  ;;  %3659 = vpow2.f32 %v2040_v46 }
0x106a   :  { %v2059_v36 = vsel %vm281_vm6, %v4291_v35, 0.0 }
0x106b   :  { %2060 = vadd.xlane.f32.xlu1 %v2059_v36 }
0x1071   :  { %v4295_v37 = vpop.eup %3655 }
0x1072   :  { %v2065_v38 = vsel %vm281_vm6, %v4295_v37, 0.0  ;;  %v4305_v49 = vpop.eup %3657 }
0x1073   :  { %2066 = vadd.xlane.f32.xlu1 %v2065_v38  ;;  %v4309_v52 = vpop.eup %3659 }
0x1077   :  { %2332 = vrot.lane.b32.xlu0 %v4199_v31, %s3723_s15  ;;  %v2056_v31 = vsel %vm281_vm6, %v4305_v49, 0.0 }
0x1084   :  { %2380 = vrot.lane.b32.xlu1 %v4209_v4, %s3723_s15  ;;  %v2062_v4 = vsel %vm281_vm6, %v4309_v52, 0.0 }
0x1095   :  { %v2046_v51 = vpop.xlane.xlu0 %2045 }
0x1096   :  { %3661 = vrcp.f32 %v2046_v51  ;;  %2057 = vadd.xlane.f32.xlu0 %v2056_v31 }
0x1097   :  { %v2049_v34 = vpop.xlane.xlu1 %2048 }
0x1098   :  { %3663 = vrcp.f32 %v2049_v34 }
0x109a   :  { %2063 = vadd.xlane.f32.xlu0 %v2062_v4 }
0x109b   :  { %v2285_v62 = vpop.permute.xlu1 %2284 }
0x109c   :  { %v2290_v29 = vsel %vm76_vm0, %v2285_v62, 0 }
0x10a0   :  { %v3662_v47 = vpop.eup %3661 }
0x10a1   :  { %v2076_v53 = vmul.f32 %v3662_v47, %v3646_v9 }
0x10a2   :  { %v3664_v25 = vpop.eup %3663 }
0x10a3   :  { %v2077_v57 = vmul.f32 %v3664_v25, %v3648_v6  ;;  %v2084_v18 = vpack.c.bf16 %v2076_v53, %v2076_v53 }
0x10a5   :  { %3419 = vmatmul.mubr.msk.bf16.vlgmr.msra.gmra.mrb[56].mxu0 %vm281_vm6, %v2084_v18  ;;  %v2085_v54 = vpack.c.bf16 %v2077_v57, %v2077_v57 }
0x10a6   :  { %3429 = vmatpush3.bf16.msra.mxu0 %v2194_v20  ;;  %3430 = vmatprep.mubr.msk.bf16.mxu0 %vm3718_vm5, %v3717_v11 }
0x10a7   :  { %3425 = vmatmul.mubr.msk.bf16.vlgmr.msra.gmra.mrb[64].mxu1 %vm281_vm6, %v2085_v54  ;;  %3440 = vmatprep.subr.bf16.mxu0 %v3717_v11 }
0x10a8   :  { %3435 = vmatpush3.bf16.msra.mxu1 %v2242_v60  ;;  %3436 = vmatprep.mubr.msk.bf16.mxu1 %vm3718_vm5, %v3717_v11 }
0x10a9   :  { %3446 = vmatprep.subr.bf16.mxu1 %v3717_v11 }
0x10b0   :  { %2428 = vrot.lane.b32.xlu0 %v4207_v3, %s3723_s15 }
0x10ee   :  { %v2052_v1 = vpop.xlane.xlu0 %2051 }
0x10ef   :  { %3665 = vrcp.f32 %v2052_v1  ;;  %v3587_v1 = vld [vmem:[%s4468_s4 + $0x10] sm:$0xff]  }
0x10f0   :  { %v2055_v2 = vpop.xlane.xlu1 %2054 }
0x10f1   :  { %3667 = vrcp.f32 %v2055_v2 }
0x10f2   :  { %v2333_v26 = vpop.permute.xlu0 %2332 }
0x10f3   :  { %v2338_v17 = vsel %vm76_vm0, %v2333_v26, 0 }
0x10f8   :  { %v2061_v5 = vpop.xlane.xlu1 %2060 }
0x10f9   :  { %v3666_v63 = vpop.eup %3665  ;;  %3669 = vrcp.f32 %v2061_v5 }
0x10fa   :  { %v2078_v9 = vmul.f32 %v3666_v63, %v4283_v22 }
0x10fb   :  { %v3668_v6 = vpop.eup %3667 }
0x10fc   :  { %v2079_v12 = vmul.f32 %v3668_v6, %v4287_v30  ;;  %v2086_v14 = vpack.c.bf16 %v2078_v9, %v2078_v9 }
0x10fe   :  { %3431 = vmatmul.mubr.msk.bf16.vlgmr.msra.gmra.mrb[60].mxu0 %vm281_vm6, %v2086_v14  ;;  %v2087_v3 = vpack.c.bf16 %v2079_v12, %v2079_v12  ;;  %v3588_v12 = vld [vmem:[%s4468_s4 + $0x18] sm:$0xff]  }
0x10ff   :  { %3441 = vmatpush3.bf16.msra.mxu0 %v2290_v29  ;;  %3442 = vmatprep.mubr.msk.bf16.mxu0 %vm3718_vm5, %v3717_v11 }
0x1100   :  { %3437 = vmatmul.mubr.msk.bf16.vlgmr.msra.gmra.mrb[68].mxu1 %vm281_vm6, %v2087_v3  ;;  %3452 = vmatprep.subr.bf16.mxu0 %v3717_v11  ;;  %v2067_v23 = vpop.xlane.xlu1 %2066 }
0x1101   :  { %3447 = vmatpush3.bf16.msra.mxu1 %v2338_v17  ;;  %3448 = vmatprep.mubr.msk.bf16.mxu1 %vm3718_vm5, %v3717_v11  ;;  %3671 = vrcp.f32 %v2067_v23 }
0x1102   :  { %3458 = vmatprep.subr.bf16.mxu1 %v3717_v11 }
0x1103   :  { %v3670_v0 = vpop.eup %3669 }
0x1104   :  { %v2081_v16 = vmul.f32 %v3670_v0, %v4291_v35  ;;  %v2381_v35 = vpop.permute.xlu1 %2380 }
0x1106   :  { %v2089_v19 = vpack.c.bf16 %v2081_v16, %v2081_v16 }
0x1108   :  { %3449 = vmatmul.mubr.msk.bf16.vlgmr.msra.gmra.mrb[72].mxu1 %vm281_vm6, %v2089_v19 }
0x1109   :  { %3460 = vmatprep.mubr.msk.bf16.mxu1 %vm3718_vm5, %v3717_v11 }
0x110b   :  { %v3672_v56 = vpop.eup %3671 }
0x110c   :  { %v2083_v15 = vmul.f32 %v3672_v56, %v4295_v37  ;;  %v2386_v37 = vsel %vm76_vm0, %v2381_v35, 0 }
0x110e   :  { %v2091_v21 = vpack.c.bf16 %v2083_v15, %v2083_v15 }
0x1123   :  { %v2058_v24 = vpop.xlane.xlu0 %2057 }
0x1124   :  { %3673 = vrcp.f32 %v2058_v24 }
0x1127   :  { %v2064_v22 = vpop.xlane.xlu0 %2063 }
0x1128   :  { %3675 = vrcp.f32 %v2064_v22 }
0x112b   :  { %v2429_v30 = vpop.permute.xlu0 %2428 }
0x112c   :  { %v2434_v32 = vsel %vm76_vm0, %v2429_v30, 0 }
0x112d   :  { %3459 = vmatpush3.bf16.msra.mxu1 %v2434_v32 }
0x112e   :  { %v3674_v13 = vpop.eup %3673  ;;  %3472 = vmatprep.subr.bf16.mxu1 %v3717_v11 }
0x112f   :  { %v2080_v33 = vmul.f32 %v3674_v13, %v4305_v49 }
0x1130   :  { %3461 = vmatmul.mubr.msk.bf16.vlgmr.msra.gmra.mrb[76].mxu1 %vm281_vm6, %v2091_v21 }
0x1131   :  { %v2088_v36 = vpack.c.bf16 %v2080_v33, %v2080_v33  ;;  %3476 = vmatprep.mubr.msk.bf16.mxu1 %vm3718_vm5, %v3717_v11 }
0x1132   :  { %v3676_v38 = vpop.eup %3675 }
0x1133   :  { %3443 = vmatmul.mubr.msk.bf16.vlgmr.msra.gmra.mrb[64].mxu0 %vm281_vm6, %v2088_v36  ;;  %v2082_v39 = vmul.f32 %v3676_v38, %v4309_v52 }
0x1134   :  { %3453 = vmatpush3.bf16.msra.mxu0 %v2386_v37  ;;  %3454 = vmatprep.mubr.msk.bf16.mxu0 %vm3718_vm5, %v3717_v11 }
0x1135   :  { %3464 = vmatprep.subr.bf16.mxu0 %v3717_v11  ;;  %v2090_v40 = vpack.c.bf16 %v2082_v39, %v2082_v39 }
0x113b   :  { %3455 = vmatmul.mubr.msk.bf16.vlgmr.msra.gmra.mrb[68].mxu0 %vm281_vm6, %v2090_v40 }
0x113c   :  { %3468 = vmatprep.mubr.msk.bf16.mxu0 %vm3718_vm5, %v3717_v11  ;;  %3465 = vmatpush3.bf16.msra.mxu0 %v3587_v1 }
0x113d   :  { %3466 = vmatprep.subr.bf16.mxu0 %v3717_v11 }
0x1140   :  { %3467 = vmatpush3.bf16.msra.mxu0 %v3588_v12 }
0x1141   :  { %3480 = vmatprep.subr.bf16.mxu0 %v3717_v11 }
0x1178   :  { %v2134_v41 = vpop.f32.mrb[56].mxu0 }
0x1179   :  { %v3420_v43 = vpop.f32.mrb[57].mxu0 }
0x117a   :  { %v2137_v45 = vpop.f32.mrb[58].mxu0  ;;  %v2182_v46 = vpop.f32.mrb[64].mxu1 }
0x117b   :  { %v3421_v28 = vpop.f32.mrb[59].mxu0  ;;  %v3426_v49 = vpop.f32.mrb[65].mxu1  ;;  %v2515_v45 = vrot.slane %v4179_v10, %v3866_v61 }
0x117c   :  { %v2185_v50 = vpop.f32.mrb[66].mxu1 }
0x117d   :  { %v3427_v51 = vpop.f32.mrb[67].mxu1 }
0x11d1   :  { %v2230_v31 = vpop.f32.mrb[60].mxu0 }
0x11d2   :  { %v3432_v34 = vpop.f32.mrb[61].mxu0 }
0x11d3   :  { %v2233_v4 = vpop.f32.mrb[62].mxu0  ;;  %v2278_v52 = vpop.f32.mrb[68].mxu1 }
0x11d4   :  { %v3560_v47 = vpack.i.bf16 %v2278_v52, %v2230_v31  ;;  %v3433_v53 = vpop.f32.mrb[63].mxu0  ;;  %v3438_v25 = vpop.f32.mrb[69].mxu1 }
0x11d5   :  { %v2281_v57 = vpop.f32.mrb[70].mxu1 }
0x11d6   :  { %3561 = vrot.lane.b32.xlu1 %v3560_v47, %s3724_s16  ;;  %v3439_v18 = vpop.f32.mrb[71].mxu1 }
0x11db   :  { %v2374_v20 = vpop.f32.mrb[72].mxu1 }
0x11dc   :  { %v3450_v54 = vpop.f32.mrb[73].mxu1 }
0x11dd   :  { %v2377_v60 = vpop.f32.mrb[74].mxu1 }
0x11de   :  { %v3451_v62 = vpop.f32.mrb[75].mxu1 }
0x11df   :  { %v3590_v62 = vld [vmem:[%s4469_s5 + $0x18] sm:$0xff]  }
0x1203   :  { %v2470_v2 = vpop.f32.mrb[76].mxu1 }
0x1204   :  { %v3462_v5 = vpop.f32.mrb[77].mxu1 }
0x1205   :  { %v2473_v63 = vpop.f32.mrb[78].mxu1 }
0x1206   :  { %v2326_v9 = vpop.f32.mrb[64].mxu0  ;;  %v3463_v6 = vpop.f32.mrb[79].mxu1 }
0x1207   :  { %v3565_v14 = vpack.i.bf16 %v2374_v20, %v2326_v9  ;;  %v3444_v26 = vpop.f32.mrb[65].mxu0 }
0x1208   :  { %v2329_v29 = vpop.f32.mrb[66].mxu0 }
0x1209   :  { %v3445_v3 = vpop.f32.mrb[67].mxu0  ;;  %3566 = vrot.lane.b32.xlu0 %v3565_v14, %s3725_s21  ;;  %v2603_v14 = vrot.slane %v4179_v10, %v4108_v42 }
0x120e   :  { %v2422_v17 = vpop.f32.mrb[68].mxu0 }
0x120f   :  { %v3570_v0 = vpack.i.bf16 %v2470_v2, %v2422_v17  ;;  %v3456_v16 = vpop.f32.mrb[69].mxu0 }
0x1210   :  { %v2425_v19 = vpop.f32.mrb[70].mxu0 }
0x1211   :  { %v3457_v23 = vpop.f32.mrb[71].mxu0  ;;  %3571 = vrot.lane.b32.xlu1 %v3570_v0, %s3726_s1  ;;  %v2609_v0 = vrot.slane %v4179_v10, %v4113_v44 }
0x1248   :  { %v3562_v24 = vpop.permute.xlu1 %3561 }
0x1249   :  { %v3564_v22 = vunpack.i.h.bf16 %v3562_v24  ;;  %v3563_v15 = vunpack.i.l.bf16 %v3562_v24 }
0x124b   :  { %v2501_v21 = vsel %vm281_vm6, %v2182_v46, %v3564_v22  ;;  %v2500_v33 = vsel %vm281_vm6, %v2134_v41, %v3563_v15  ;;  %v3592_v22 = vld [vmem:[%s4470_s6 + $0x28] sm:$0xff]   ;;  %v3593_v15 = vld [vmem:[%s4470_s6 + $0x30] sm:$0xff]  }
0x127b   :  { %v3567_v56 = vpop.permute.xlu0 %3566 }
0x127c   :  { %v3569_v30 = vunpack.i.h.bf16 %v3567_v56  ;;  %v3568_v32 = vunpack.i.l.bf16 %v3567_v56  ;;  %v3591_v56 = vld [vmem:[%s4470_s6 + $0x20] sm:$0xff]  }
0x127e   :  { %v2503_v38 = vsel %vm1190_vm7, %v2501_v21, %v3569_v30  ;;  %v2502_v37 = vsel %vm1190_vm7, %v2500_v33, %v3568_v32  ;;  %v3594_v30 = vld [vmem:[%s4470_s6 + $0x38] sm:$0xff]   ;;  %v2621_v32 = vrot.slane %v4179_v10, %v1308_v58 }
0x1283   :  { %v3572_v13 = vpop.permute.xlu1 %3571 }
0x1284   :  { %v3574_v35 = vunpack.i.h.bf16 %v3572_v13  ;;  %v3573_v36 = vunpack.i.l.bf16 %v3572_v13 }
0x1286   :  { %v2505_v39 = vsel %vm1193_vm8, %v2503_v38, %v3574_v35  ;;  %v2504_v40 = vsel %vm1193_vm8, %v2502_v37, %v3573_v36 }
0x1287   :  { %v2506_v43 = vpack.c.bf16 %v2505_v39, %v2504_v40 }
0x1289   :  { %3469 = vmatmul.mubr.msk.bf16.vlgmr.msra.gmra.mrb[72].mxu0 %vm155_vm4, %v2506_v43 }
0x128a   :  { %3488 = vmatprep.mubr.msk.bf16.mxu0 %vm3718_vm5, %v3717_v11  ;;  %3481 = vmatpush3.bf16.msra.mxu0 %v3591_v56 }
0x128b   :  { %3482 = vmatprep.subr.bf16.mxu0 %v3717_v11 }
0x128e   :  { %3483 = vmatpush3.bf16.msra.mxu0 %v3592_v22 }
0x128f   :  { %3484 = vmatprep.subr.bf16.mxu0 %v3717_v11 }
0x1292   :  { %3485 = vmatpush3.bf16.msra.mxu0 %v3593_v15  ;;  %v2809_v15 = vrot.slane %v4179_v10, %v1496_v48 }
0x1293   :  { %3486 = vmatprep.subr.bf16.mxu0 %v3717_v11 }
0x1296   :  { %3487 = vmatpush3.bf16.msra.mxu0 %v3594_v30 }
0x135c   :  { %v2565_v41 = vpop.f32.mrb[72].mxu0 }
0x135d   :  { %v2566_v46 = vadd.f32 %v2565_v41, %v2515_v45  ;;  %v3470_v28 = vpop.f32.mrb[73].mxu0 }
0x135e   :  { %v2568_v49 = vpop.f32.mrb[74].mxu0 }
0x135f   :  { %v2569_v50 = vadd.f32 %v2568_v49, %v2515_v45  ;;  %v3471_v51 = vpop.f32.mrb[75].mxu0  ;;  %v2572_v31 = vadd.f32 %v2566_v46, %v4167_v7 }
0x1361   :  { %v2573_v34 = vadd.f32 %v2569_v50, %v4169_v8  ;;  %v2574_v4 = vsel %vm155_vm4, %v2572_v31, 0.0  ;;  %v3589_v8 = vld [vmem:[%s4469_s5 + $0x10] sm:$0xff]  }
0x1362   :  { %2575 = vadd.xlane.f32.xlu0 %v2574_v4  ;;  %3473 = vmatpush3.bf16.msra.mxu1 %v3589_v8 }
0x1363   :  { %v2577_v52 = vsel %vm155_vm4, %v2573_v34, 0.0  ;;  %3474 = vmatprep.subr.bf16.mxu1 %v3717_v11 }
0x1364   :  { %2578 = vadd.xlane.f32.xlu1 %v2577_v52 }
0x1366   :  { %3475 = vmatpush3.bf16.msra.mxu1 %v3590_v62 }
0x1367   :  { %3492 = vmatprep.subr.bf16.mxu1 %v3717_v11 }
0x13ef   :  { %v2576_v47 = vpop.xlane.xlu0 %2575 }
0x13f0   :  { %v2580_v53 = vmul.f32 0.03125, %v2576_v47 }
0x13f1   :  { %v2579_v25 = vpop.xlane.xlu1 %2578 }
0x13f2   :  { %v2582_v61 = vsub.f32 %v2572_v31, %v2580_v53  ;;  %v2581_v57 = vmul.f32 0.03125, %v2579_v25 }
0x13f4   :  { %v2583_v18 = vsub.f32 %v2573_v34, %v2581_v57  ;;  %v2584_v20 = vmul.f32 %v2582_v61, %v2582_v61 }
0x13f6   :  { %v2586_v54 = vsel %vm155_vm4, %v2584_v20, 0.0  ;;  %v2585_v60 = vmul.f32 %v2583_v18, %v2583_v18 }
0x13f7   :  { %2587 = vadd.xlane.f32.xlu0 %v2586_v54 }
0x13f8   :  { %v2589_v7 = vsel %vm155_vm4, %v2585_v60, 0.0 }
0x13fb   :  { %2590 = vadd.xlane.f32.xlu0 %v2589_v7 }
0x1484   :  { %v2588_v1 = vpop.xlane.xlu0 %2587 }
0x1485   :  { %v2592_v2 = vmul.f32 0.03125, %v2588_v1 }
0x1487   :  { %v2594_v5 = vadd.f32 1e-07, %v2592_v2 }
0x1488   :  { %v2591_v63 = vpop.xlane.xlu0 %2590 }
0x1489   :  { %3677 = vrsqrt.f32 %v2594_v5  ;;  %v2593_v9 = vmul.f32 0.03125, %v2591_v63 }
0x148b   :  { %v2595_v6 = vadd.f32 1e-07, %v2593_v9 }
0x148d   :  { %3679 = vrsqrt.f32 %v2595_v6 }
0x1493   :  { %v3678_v12 = vpop.eup %3677 }
0x1494   :  { %v2598_v26 = vmul.f32 %v3678_v12, %v2582_v61  ;;  %v2709_v61 = vrot.slane %v4179_v10, %v1395_v27 }
0x1496   :  { %v2604_v3 = vmul.f32 %v2603_v14, %v2598_v26 }
0x1497   :  { %v3680_v29 = vpop.eup %3679 }
0x1498   :  { %v2599_v17 = vmul.f32 %v3680_v29, %v2583_v18  ;;  %v2610_v19 = vadd.f32 %v2609_v0, %v2604_v3 }
0x149a   :  { %v2605_v16 = vmul.f32 %v2603_v14, %v2599_v17  ;;  %v3595_v17 = vld [vmem:[%s4471_s7] sm:$0xff]  }
0x149c   :  { %v2611_v23 = vadd.f32 %v2609_v0, %v2605_v16  ;;  %v3596_v0 = vld [vmem:[%s4471_s7 + $0x8] sm:$0xff]  }
0x149e   :  { %v2612_v24 = vpack.c.bf16 %v2611_v23, %v2610_v19 }
0x14a0   :  { %3477 = vmatmul.mubr.msk.bf16.vlgmr.msra.gmra.mrb[80].mxu1 %vm155_vm4, %v2612_v24 }
0x14a1   :  { %3496 = vmatprep.mubr.msk.bf16.mxu1 %vm3718_vm5, %v3717_v11  ;;  %3493 = vmatpush3.bf16.msra.mxu1 %v3595_v17 }
0x14a2   :  { %3494 = vmatprep.subr.bf16.mxu1 %v3717_v11 }
0x14a5   :  { %3495 = vmatpush3.bf16.msra.mxu1 %v3596_v0 }
0x14a6   :  { %3500 = vmatprep.subr.bf16.mxu1 %v3717_v11 }
0x1573   :  { %v2671_v13 = vpop.f32.mrb[80].mxu1 }
0x1574   :  { %v2672_v21 = vadd.f32 %v2671_v13, %v2621_v32  ;;  %v3478_v33 = vpop.f32.mrb[81].mxu1 }
0x1575   :  { %v2674_v35 = vpop.f32.mrb[82].mxu1 }
0x1576   :  { %v2680_v36 = vmul.f32 0.044715, %v2672_v21  ;;  %v2675_v38 = vadd.f32 %v2674_v35, %v2621_v32  ;;  %v3479_v37 = vpop.f32.mrb[83].mxu1  ;;  %v2678_v34 = vmul.f32 0.5, %v2672_v21  ;;  %v2815_v32 = vrot.slane %v4179_v10, %v1502_v59  ;;  %v3691_v10 = vld [vmem:[%s4473_s9] sm:$0xf] }
0x1577   :  { %s3727_s9 = smov [#allocation2]  }
0x1578   :  { %v2682_v39 = vmul.f32 %v2680_v36, %v2672_v21  ;;  %v2681_v40 = vmul.f32 0.044715, %v2675_v38  ;;  %v2679_v4 = vmul.f32 0.5, %v2675_v38  ;;  %s2964_s17 = sshll.u32 %s3727_s9, 4  ;;  %s2965_s17 = int_to_ptr.vmem [resolvable:$true] %s2964_s17 }
0x1579   :  { %s3692_s18 = scalar_lea.vmem %s2965_s17, 32  ;;  %p3697_p1 = scmp.lt.s32.totalorder %s2965_s17, %s2965_s17 }
0x157a   :  { %v2684_v43 = vmul.f32 %v2682_v39, %v2672_v21  ;;  %v2683_v45 = vmul.f32 %v2681_v40, %v2675_v38  ;;  %p3693_p0 = scmp.ne.s32.totalorder %s2965_s17, %s3692_s18  ;;  %p3698_p2 = scmp.lt.s32.totalorder %s3692_s18, %s3692_s18 }
0x157c   :  { %v2686_v41 = vadd.f32 %v2684_v43, %v2672_v21  ;;  %v2685_v46 = vmul.f32 %v2683_v45, %v2675_v38  ;;  %p3699_p3 = por %p3698_p2, %p3697_p1 }
0x157e   :  { %v2688_v28 = vmul.f32 0.7978846, %v2686_v41  ;;  %v2687_v49 = vadd.f32 %v2685_v46, %v2675_v38  ;;  %p3700_p4 = pnand %p3699_p3, %p3693_p0 }
0x1580   :  { %3681 = vtanh.f32 %v2688_v28  ;;  %v2689_v50 = vmul.f32 0.7978846, %v2687_v49  ;;  %v2829_v28 = vrot.slane %v3691_v10, %v4108_v42  ;;  %v2906_v42 = vrot.slane %v3691_v10, %v4113_v44 }
0x1582   :  { %3683 = vtanh.f32 %v2689_v50 }
0x158a   :  { %v3682_v51 = vpop.eup %3681 }
0x158b   :  { %v2692_v58 = vadd.f32 1.0, %v3682_v51 }
0x158c   :  { %v3684_v31 = vpop.eup %3683 }
0x158d   :  { %v2693_v52 = vadd.f32 1.0, %v3684_v31  ;;  %v2694_v47 = vmul.f32 %v2692_v58, %v2678_v34 }
0x158f   :  { %v2695_v53 = vmul.f32 %v2693_v52, %v2679_v4 }
0x1591   :  { %v2696_v25 = vpack.c.bf16 %v2695_v53, %v2694_v47 }
0x1593   :  { %3489 = vmatmul.mubr.msk.bf16.vlgmr.msra.gmra.mrb[76].mxu0 %vm1421_vm9, %v2696_v25 }
0x1666   :  { %v2771_v57 = vpop.f32.mrb[76].mxu0 }
0x1667   :  { %v2772_v18 = vadd.f32 %v2771_v57, %v2709_v61  ;;  %v3490_v20 = vpop.f32.mrb[77].mxu0 }
0x1668   :  { %v2774_v54 = vpop.f32.mrb[78].mxu0 }
0x1669   :  { %v2775_v60 = vadd.f32 %v2774_v54, %v2709_v61  ;;  %v3491_v7 = vpop.f32.mrb[79].mxu0  ;;  %v2778_v8 = vadd.f32 %v2772_v18, %v2610_v19 }
0x166b   :  { %v2779_v62 = vadd.f32 %v2775_v60, %v2611_v23  ;;  %v2780_v1 = vsel %vm155_vm4, %v2778_v8, 0.0 }
0x166c   :  { %2781 = vadd.xlane.f32.xlu0 %v2780_v1 }
0x166d   :  { %v2783_v2 = vsel %vm155_vm4, %v2779_v62, 0.0 }
0x166e   :  { %2784 = vadd.xlane.f32.xlu1 %v2783_v2 }
0x16f9   :  { %v2782_v5 = vpop.xlane.xlu0 %2781 }
0x16fa   :  { %v2786_v63 = vmul.f32 0.03125, %v2782_v5 }
0x16fb   :  { %v2785_v9 = vpop.xlane.xlu1 %2784 }
0x16fc   :  { %v2788_v6 = vsub.f32 %v2778_v8, %v2786_v63  ;;  %v2787_v12 = vmul.f32 0.03125, %v2785_v9 }
0x16fe   :  { %v2789_v27 = vsub.f32 %v2779_v62, %v2787_v12  ;;  %v2790_v14 = vmul.f32 %v2788_v6, %v2788_v6 }
0x1700   :  { %v2792_v26 = vsel %vm155_vm4, %v2790_v14, 0.0  ;;  %v2791_v29 = vmul.f32 %v2789_v27, %v2789_v27 }
0x1701   :  { %2793 = vadd.xlane.f32.xlu0 %v2792_v26 }
0x1702   :  { %v2795_v3 = vsel %vm155_vm4, %v2791_v29, 0.0 }
0x1703   :  { %2796 = vadd.xlane.f32.xlu1 %v2795_v3 }
0x1714   :  { %2907 = vrot.lane.b32.xlu1 %v3595_v17, %s3722_s14 }
0x1717   :  { %2909 = vrot.lane.b32.xlu0 %v3596_v0, %s3722_s14 }
0x178e   :  { %v2794_v16 = vpop.xlane.xlu0 %2793 }
0x178f   :  { %v2798_v19 = vmul.f32 0.03125, %v2794_v16 }
0x1790   :  { %v2797_v23 = vpop.xlane.xlu1 %2796 }
0x1791   :  { %v2800_v24 = vadd.f32 1e-07, %v2798_v19  ;;  %v2799_v56 = vmul.f32 0.03125, %v2797_v23 }
0x1792   :  { %v2910_v59 = vpop.permute.xlu0 %2909 }
0x1793   :  { %3685 = vrsqrt.f32 %v2800_v24  ;;  %v2801_v22 = vadd.f32 1e-07, %v2799_v56 }
0x1794   :  { %v2908_v55 = vpop.permute.xlu1 %2907 }
0x1795   :  { %3687 = vrsqrt.f32 %v2801_v22 }
0x179d   :  { %v3686_v30 = vpop.eup %3685 }
0x179e   :  { %v2804_v13 = vmul.f32 %v3686_v30, %v2788_v6 }
0x179f   :  { %v3688_v21 = vpop.eup %3687 }
0x17a0   :  { %v2810_v33 = vmul.f32 %v2809_v15, %v2804_v13  ;;  %v2805_v35 = vmul.f32 %v3688_v21, %v2789_v27 }
0x17a2   :  { %v2816_v36 = vadd.f32 %v2815_v32, %v2810_v33  ;;  %v2811_v38 = vmul.f32 %v2809_v15, %v2805_v35 }
0x17a4   :  { %v2817_v37 = vadd.f32 %v2815_v32, %v2811_v38  ;;  %v3084_v39 = vpack.c.bf16 %v2816_v36, %v2816_v36 }
0x17a6   :  { %v3085_v40 = vpack.c.bf16 %v2817_v37, %v2817_v37  ;;  %v2832_v45 = vunpack.c.l.b16 %v3084_v39 }
0x17a8   :  { %v2833_v43 = vunpack.c.l.b16 %v3085_v40 }
0x17aa   :  { %v2834_v41 = vrot.slane %v2833_v43, 7 }
0x17ac   :  { %v2836_v46 = vsel %vm2835_vm10, %v2834_v41, %v2832_v45 }
0x17ad   :  { %v2837_v48 = vpack.c.b16 %v2836_v46, %v2836_v46 }
0x17af   :  { %3497 = vmatmul.mubr.msk.bf16.vlgmr.msra.gmra.mrb[84].mxu1 %vm155_vm4, %v2837_v48 }
0x17b0   :  { %3504 = vmatprep.mubr.msk.bf16.mxu1 %vm3718_vm5, %v3717_v11  ;;  %3501 = vmatpush3.bf16.msra.mxu1 %v2908_v55 }
0x17b1   :  { %3502 = vmatprep.subr.bf16.mxu1 %v3717_v11 }
0x17b4   :  { %3503 = vmatpush3.bf16.msra.mxu1 %v2910_v59 }
0x1882   :  { %v2887_v49 = vpop.f32.mrb[84].mxu1 }
0x1883   :  { %v2888_v50 = vadd.f32 %v2887_v49, %v2829_v28  ;;  %v3498_v51 = vpop.f32.mrb[85].mxu1 }
0x1884   :  { %v2890_v58 = vpop.f32.mrb[86].mxu1 }
0x1885   :  { %v2894_v31 = vmul.f32 0.044715, %v2888_v50  ;;  %v3499_v34 = vpop.f32.mrb[87].mxu1  ;;  %v2893_v11 = vmul.f32 0.5, %v2888_v50 }
0x1887   :  { %v2895_v4 = vmul.f32 %v2894_v31, %v2888_v50 }
0x1889   :  { %v2896_v52 = vmul.f32 %v2895_v4, %v2888_v50 }
0x188b   :  { %v2897_v47 = vadd.f32 %v2896_v52, %v2888_v50 }
0x188d   :  { %v2898_v53 = vmul.f32 0.7978846, %v2897_v47 }
0x188f   :  { %3689 = vtanh.f32 %v2898_v53 }
0x1899   :  { %v3690_v25 = vpop.eup %3689 }
0x189a   :  { %v2900_v61 = vadd.f32 1.0, %v3690_v25 }
0x189c   :  { %v2901_v57 = vmul.f32 %v2900_v61, %v2893_v11 }
0x189e   :  { %v2902_v18 = vpack.c.bf16 %v2901_v57, %v2901_v57 }
0x18a0   :  { %3505 = vmatmul.mubr.msk.bf16.vlgmr.msra.gmra.mrb[88].mxu1 %vm155_vm4, %v2902_v18 }
0x1973   :  { %v2950_v20 = vpop.f32.mrb[88].mxu1 }
0x1974   :  { %v2951_v54 = vadd.f32 %v2950_v20, %v2906_v42  ;;  %v3506_v60 = vpop.f32.mrb[89].mxu1 }
0x1975   :  { %v2953_v7 = vpop.f32.mrb[90].mxu1 }
0x1976   :  { %v3507_v8 = vpop.f32.mrb[91].mxu1  ;;  %2957 = vst.msk [vmem:[#allocation2] sm:$0x3] %vm2956_vm11, %v2951_v54 }
0x1977   :  { %3703 = shalt.err (!%p3700_p4)
}
0x1978   :  { %s3704_s22 = scalar_lea.hbm %s4474_s10, 32 }
0x1979   :  { %p3705_p5 = scmp.ne.s32.totalorder %s4474_s10, %s3704_s22  ;;  %p3708_p6 = scmp.lt.u32.totalorder %s3704_s22, %s4474_s10 }
0x197b   :  { %p3710_p7 = pnand %p3708_p6, %p3705_p5 }
0x197d   :  { %3713 = shalt.err (!%p3710_p7)
}
0x197e   :  { %2967 = dma.vmem_to_hbm [thread:$0]  %s2965_s17, 32, %s4474_s10, [#allocation3]  }
0x197f   :  { %3714 = dma.done.wait [#allocation3], 32  }
0x1980   :  { %3715 = vsyncadd [#allocation3], 4294967264 }
0x1981   :  { %2971 = vsyncpa [#allocation3], 1 }

</bundles_post_ra>
